<compile_context>
chip_gen: v6e
topology: v6e:2x2x1
jax: 0.10.0
libtpu: 0.0.40
codegen_flags: <defaults>
</compile_context>

<pallas_src>
import jax
import jax.numpy as jnp
import numpy as np
from jax import lax
from jax.experimental import pallas as pl
from jax.experimental.pallas import tpu as pltpu

# ----------------------------- small synthetic sizes -----------------------------
B = 2            # batch
S = 16           # protein sequence length
D = 32           # dim == d_g_feats
NQ = 3           # args.num_questions
NW = 32          # n_word (protein vocab)
WINDOW = 2       # conv "window"  -> kernel size K = 2*window + 1
K = 2 * WINDOW + 1
LAYER_CNN = 3
LAYER_OUT = 3
EPS = 1e-5       # torch nn.LayerNorm default

# ----------------------------- packed-parameter layout ---------------------------
# packA (ROWS_A, D): everything whose last dim is D (weights stored as (in, out)).
O_PW1 = 0                              # prompt-projection Linear1 weight (NQ*D, D)
O_PW2 = O_PW1 + NQ * D                 # prompt-projection Linear2 weight (D, D)
O_WA = O_PW2 + D                       # W_attention weight (D, D)
O_BAND = O_WA + D                      # banded conv matrices (LAYER_CNN*K*D, D)
O_VEC = O_BAND + LAYER_CNN * K * D     # 7 rows: proj_b1,proj_b2,mol_g,mol_b,prot_g,prot_b,ba
O_CB = O_VEC + 7                       # conv bias rows, broadcast to D lanes (LAYER_CNN, D)
ROWS_A = O_CB + LAYER_CNN              # 650

# packB (ROWS_B, 2*D): output head.
O_WOUT = 0                             # W_out weights (LAYER_OUT*2D, 2D)
O_WOUTB = LAYER_OUT * 2 * D            # W_out biases (LAYER_OUT, 2D)
O_WINT = O_WOUTB + LAYER_OUT           # W_interaction weight as a row (1, 2D)
O_WINTB = O_WINT + 1                   # W_interaction bias at [., 0]
ROWS_B = O_WINTB + 1                   # 197


def _layernorm(x, gamma, beta):
    mu = jnp.mean(x, axis=-1, keepdims=True)
    var = jnp.mean((x - mu) ** 2, axis=-1, keepdims=True)
    return (x - mu) * lax.rsqrt(var + EPS) * gamma + beta


def _gelu(x):  # exact (erf) GELU, matching torch nn.GELU()
    return 0.5 * x * (1.0 + lax.erf(x * 0.7071067811865476))


def _relu(x):
    return jnp.maximum(x, 0.0)


# --------------------------------- the kernel ------------------------------------
def dti_kernel(phar_ref, mol_ref, wv_ref, shift_ref, pa_ref, pb_ref, out_ref):
    # One batch element per grid step (grid axis is "parallel").
    p = phar_ref[0]          # (1, NQ*D)
    mrep = mol_ref[0]        # (1, D)
    wv = wv_ref[0]           # (S, D)

    vecs = pa_ref[O_VEC:O_VEC + 7, :]                        # (7, D), one vreg
    proj_b1, proj_b2 = vecs[0:1], vecs[1:2]
    mol_g, mol_b = vecs[2:3], vecs[3:4]
    prot_g, prot_b = vecs[4:5], vecs[5:6]
    ba = vecs[6:7]

    # ---- molecule branch: prompt projection MLP + residual + LayerNorm ----
    h1 = _gelu(jnp.dot(p, pa_ref[O_PW1:O_PW1 + NQ * D, :],
                       preferred_element_type=jnp.float32) + proj_b1)
    prompt = jnp.dot(h1, pa_ref[O_PW2:O_PW2 + D, :],
                     preferred_element_type=jnp.float32) + proj_b2
    mol = _layernorm(prompt + mrep, mol_g, mol_b)            # (1, D)

    # ---- protein branch: LayerNorm, then the stacked 1-channel "same" conv+ReLU ----
    # Re-expressed as MXU matmuls: y = SHIFT_ALL @ xs gives the K seq-shifted
    # copies (zero padded); each is multiplied by a precomputed banded (D, D)
    # matrix that carries the K feature-axis taps (and the feature-edge zeros).
    xs = _layernorm(wv, prot_g, prot_b)                      # (S, D)
    shift_all = shift_ref[...]                               # (K*S, S)
    for l in range(LAYER_CNN):
        y = jnp.dot(shift_all, xs, preferred_element_type=jnp.float32)   # (K*S, D)
        conv = None
        for di in range(K):
            r0 = O_BAND + (l * K + di) * D
            term = jnp.dot(y[di * S:(di + 1) * S, :], pa_ref[r0:r0 + D, :],
                           preferred_element_type=jnp.float32)
            conv = term if conv is None else conv + term
        # conv bias added once (stored broadcast across D lanes).
        xs = _relu(conv + pa_ref[O_CB + l:O_CB + l + 1, :])  # (S, D)

    # ---- attention pooling over the protein sequence (plain mean, as in torch) ----
    wa = pa_ref[O_WA:O_WA + D, :]
    h = _relu(jnp.dot(mol, wa, preferred_element_type=jnp.float32) + ba)    # (1, D)
    hs = _relu(jnp.dot(xs, wa, preferred_element_type=jnp.float32) + ba)    # (S, D)
    weights = jnp.tanh(jnp.sum(h * hs, axis=-1, keepdims=True))             # (S, 1)
    prot_vec = jnp.mean(weights * hs, axis=0, keepdims=True)                # (1, D)

    # ---- output MLP head; first layer applied to the two halves separately so the
    #      concat([mol, prot_vec]) never materializes ----
    cat = _relu(
        jnp.dot(mol, pb_ref[O_WOUT:O_WOUT + D, :],
                preferred_element_type=jnp.float32)
        + jnp.dot(prot_vec, pb_ref[O_WOUT + D:O_WOUT + 2 * D, :],
                  preferred_element_type=jnp.float32)
        + pb_ref[O_WOUTB:O_WOUTB + 1, :])                                    # (1, 2D)
    for j in range(1, LAYER_OUT):
        wj = pb_ref[O_WOUT + j * 2 * D:O_WOUT + (j + 1) * 2 * D, :]
        cat = _relu(jnp.dot(cat, wj, preferred_element_type=jnp.float32)
                    + pb_ref[O_WOUTB + j:O_WOUTB + j + 1, :])

    wint = pb_ref[O_WINT:O_WINT + 1, :]                                      # (1, 2D)
    wintb = pb_ref[O_WINTB:O_WINTB + 1, :]                                   # (1, 2D), [0,0] used
    out = jnp.sum(cat * wint, axis=-1, keepdims=True) + wintb[:, 0:1]        # (1, 1)
    out_ref[...] = out.reshape(1, 1, 1)


# ------------------------------ wrapper-side packing ------------------------------
def _build_band_matrices(conv_w):
    """T[l, di, c, d] = w[l, di, c - d + W] (0 outside the band) -> (L*K*D, D)."""
    w = conv_w.reshape(LAYER_CNN, K, K)
    d_in = jnp.arange(D)[:, None]
    d_out = jnp.arange(D)[None, :]
    dj = d_in - d_out + WINDOW
    valid = (dj >= 0) & (dj < K)
    djc = jnp.clip(dj, 0, K - 1)
    band = jnp.where(valid[None, None], w[:, :, djc], 0.0)   # (L, K, D, D)
    return band.reshape(LAYER_CNN * K * D, D)


def _build_shift_matrix():
    """SHIFT_ALL[di*S + s, s'] = 1 iff s' = s + di - W (zero-padded 'same' shift)."""
    s = np.arange(S)
    blocks = []
    for di in range(K):
        tgt = s + (di - WINDOW)
        mask = ((tgt >= 0) & (tgt < S)).astype(np.float32)
        oh = np.zeros((S, S), np.float32)
        oh[s, np.clip(tgt, 0, S - 1)] = 1.0
        blocks.append(oh * mask[:, None])
    return jnp.asarray(np.concatenate(blocks, axis=0))       # (K*S, S)


def make_params(key):
    # Toy init. Weights are stored as (in, out) = torch weight.T; values are made
    # non-degenerate (nonzero biases, ~1 gammas) so the self-check exercises every
    # parameter path.
    ks = jax.random.split(key, 16)
    f32 = jnp.float32
    n = lambda k, shape, s: s * jax.random.normal(k, shape, f32)
    return {
        "proj_w1": n(ks[0], (NQ * D, D), 0.1),  "proj_b1": n(ks[1], (1, D), 0.1),
        "proj_w2": n(ks[2], (D, D), 0.1),       "proj_b2": n(ks[3], (1, D), 0.1),
        "emb":     n(ks[4], (NW, D), 0.5),
        "mol_gamma": 1.0 + n(ks[5], (1, D), 0.1),  "mol_beta": n(ks[6], (1, D), 0.1),
        "prot_gamma": 1.0 + n(ks[7], (1, D), 0.1), "prot_beta": n(ks[8], (1, D), 0.1),
        "conv_w": n(ks[9], (LAYER_CNN, K * K), 0.2),
        "conv_b": n(ks[10], (LAYER_CNN, 1), 0.1),
        "wa": n(ks[11], (D, D), 0.2),           "ba": n(ks[12], (1, D), 0.1),
        "wout_w": n(ks[13], (LAYER_OUT, 2 * D, 2 * D), 0.15),
        "wout_b": n(ks[14], (LAYER_OUT, 1, 2 * D), 0.1),
        "wint_w": n(ks[15], (2 * D, 1), 0.3),
        "wint_b": jnp.full((1, 1), 0.05, f32),
    }


@jax.jit
def phar_dti_forward(phar_prompt, mol_repr, protein_batch, params):
    Bn = mol_repr.shape[0]
    phar3 = phar_prompt.reshape(Bn, 1, NQ * D)
    mol3 = mol_repr.reshape(Bn, 1, D)
    # nn.Embedding gather kept in XLA (scales with vocab size); kernel sees (B, S, D).
    wv = jnp.take(params["emb"], protein_batch, axis=0)

    packA = jnp.concatenate([
        params["proj_w1"], params["proj_w2"], params["wa"],
        _build_band_matrices(params["conv_w"]),
        params["proj_b1"], params["proj_b2"],
        params["mol_gamma"], params["mol_beta"],
        params["prot_gamma"], params["prot_beta"],
        params["ba"],
        jnp.broadcast_to(params["conv_b"], (LAYER_CNN, D)),
    ], axis=0)                                               # (ROWS_A, D)

    packB = jnp.concatenate([
        params["wout_w"].reshape(LAYER_OUT * 2 * D, 2 * D),
        params["wout_b"].reshape(LAYER_OUT, 2 * D),
        params["wint_w"].T,
        jnp.pad(params["wint_b"], ((0, 0), (0, 2 * D - 1))),
    ], axis=0)                                               # (ROWS_B, 2*D)

    shift_all = _build_shift_matrix()                        # (K*S, S)

    out = pl.pallas_call(
        dti_kernel,
        out_shape=jax.ShapeDtypeStruct((Bn, 1, 1), jnp.float32),
        grid=(Bn,),
        in_specs=[
            pl.BlockSpec((1, 1, NQ * D), lambda b: (b, 0, 0)),   # phar prompt (flat)
            pl.BlockSpec((1, 1, D), lambda b: (b, 0, 0)),        # molecule_repr
            pl.BlockSpec((1, S, D), lambda b: (b, 0, 0)),        # word vectors
            pl.BlockSpec((K * S, S), lambda b: (0, 0)),          # shift matrices
            pl.BlockSpec((ROWS_A, D), lambda b: (0, 0)),         # packed D-wide params
            pl.BlockSpec((ROWS_B, 2 * D), lambda b: (0, 0)),     # packed 2D-wide params
        ],
        out_specs=pl.BlockSpec((1, 1, 1), lambda b: (b, 0, 0)),
        compiler_params=pltpu.CompilerParams(
            dimension_semantics=("parallel",)),                  # v7x: 2 TCs split batch
    )(phar3, mol3, wv, shift_all, packA, packB)
    return out.reshape(Bn, 1)


# ------------------------------ pure-JAX reference ------------------------------
def _ref_forward(phar_prompt, mol_repr, protein_batch, params):
    hi = jax.lax.Precision.HIGHEST
    relu = lambda x: jnp.maximum(x, 0.0)
    gelu = lambda x: 0.5 * x * (1.0 + lax.erf(x * 0.7071067811865476))

    def ln(x, g, b):
        mu = jnp.mean(x, -1, keepdims=True)
        var = jnp.mean((x - mu) ** 2, -1, keepdims=True)
        return (x - mu) * lax.rsqrt(var + EPS) * g + b

    Bn = mol_repr.shape[0]
    p = phar_prompt.reshape(Bn, -1)
    h1 = gelu(jnp.dot(p, params["proj_w1"], precision=hi) + params["proj_b1"])
    prompt = jnp.dot(h1, params["proj_w2"], precision=hi) + params["proj_b2"]
    mol = ln(prompt + mol_repr, params["mol_gamma"], params["mol_beta"])

    wv = jnp.take(params["emb"], protein_batch, axis=0)
    xs = ln(wv, params["prot_gamma"], params["prot_beta"])
    w = params["conv_w"].reshape(LAYER_CNN, K, K)
    for l in range(LAYER_CNN):
        xp = jnp.pad(xs, ((0, 0), (WINDOW, WINDOW), (WINDOW, WINDOW)))
        acc = jnp.full((Bn, S, D), params["conv_b"][l, 0])
        for di in range(K):
            for dj in range(K):
                acc = acc + w[l, di, dj] * xp[:, di:di + S, dj:dj + D]
        xs = relu(acc)

    h = relu(jnp.dot(mol, params["wa"], precision=hi) + params["ba"])
    hs = relu(jnp.einsum("bsd,de->bse", xs, params["wa"], precision=hi) + params["ba"])
    weights = jnp.tanh(jnp.sum(h[:, None, :] * hs, axis=-1, keepdims=True))
    prot_vec = jnp.mean(weights * hs, axis=1)

    cat = jnp.concatenate([mol, prot_vec], axis=1)
    for j in range(LAYER_OUT):
        cat = relu(jnp.dot(cat, params["wout_w"][j], precision=hi) + params["wout_b"][j])
    return jnp.dot(cat, params["wint_w"], precision=hi) + params["wint_b"]


if __name__ == "__main__":
    key = jax.random.PRNGKey(0)
    k1, k2, k3, kp = jax.random.split(key, 4)
    # outputs of the (external) PharVQA embedding model, treated as inputs here
    phar_prompt = jax.random.normal(k1, (B, NQ, D), jnp.float32)   # molecules_phar_prompt
    mol_repr = jax.random.normal(k2, (B, D), jnp.float32)          # molecule_repr
    protein_batch = jax.random.randint(k3, (B, S), 0, NW)          # protein token ids

    params = make_params(kp)
    out = phar_dti_forward(phar_prompt, mol_repr, protein_batch, params)
    jax.block_until_ready(out)
    assert out.shape == (B, 1) and out.dtype == jnp.float32

    ref = _ref_forward(phar_prompt, mol_repr, protein_batch, params)
    np.testing.assert_allclose(np.asarray(out), np.asarray(ref), rtol=2e-2, atol=1e-3)
    print("KERNEL_OK")
</pallas_src>

<mosaic_0001>
module attributes {stable_mosaic.version = 11 : i64} {
  func.func @dti_kernel(%arg0: i32, %arg1: memref<1x1x96xf32, #tpu.memory_space<vmem>>, %arg2: memref<1x1x32xf32, #tpu.memory_space<vmem>>, %arg3: memref<1x16x32xf32, #tpu.memory_space<vmem>>, %arg4: memref<80x16xf32, #tpu.memory_space<vmem>>, %arg5: memref<650x32xf32, #tpu.memory_space<vmem>>, %arg6: memref<197x64xf32, #tpu.memory_space<vmem>>, %arg7: memref<1x1x1xf32, #tpu.memory_space<vmem>>) attributes {dimension_semantics = [#tpu.dimension_semantics<parallel>], iteration_bounds = array<i64: 2>, scalar_prefetch = 0 : i64, scratch_operands = 0 : i64, tpu.core_type = #tpu.core_type<tc>, window_params = [{transform_indices = @transform_0, window_bounds = array<i64: 1, 1, 96>}, {transform_indices = @transform_1, window_bounds = array<i64: 1, 1, 32>}, {transform_indices = @transform_2, window_bounds = array<i64: 1, 16, 32>}, {pipeline_mode = #tpu.pipeline_mode<synchronous>, transform_indices = @transform_3, window_bounds = array<i64: 80, 16>}, {pipeline_mode = #tpu.pipeline_mode<synchronous>, transform_indices = @transform_4, window_bounds = array<i64: 650, 32>}, {pipeline_mode = #tpu.pipeline_mode<synchronous>, transform_indices = @transform_5, window_bounds = array<i64: 197, 64>}, {transform_indices = @transform_6, window_bounds = array<i64: 1, 1, 1>}]} {
    %c0 = arith.constant 0 : index
    %c0_0 = arith.constant 0 : index
    %c0_1 = arith.constant 0 : index
    %0 = vector.load %arg1[%c0, %c0_0, %c0_1] : memref<1x1x96xf32, #tpu.memory_space<vmem>>, vector<1x1x96xf32>
    %1 = vector.shape_cast %0 : vector<1x1x96xf32> to vector<1x96xf32>
    %c0_2 = arith.constant 0 : index
    %c0_3 = arith.constant 0 : index
    %c0_4 = arith.constant 0 : index
    %2 = vector.load %arg2[%c0_2, %c0_3, %c0_4] : memref<1x1x32xf32, #tpu.memory_space<vmem>>, vector<1x1x32xf32>
    %3 = vector.shape_cast %2 : vector<1x1x32xf32> to vector<1x32xf32>
    %c0_5 = arith.constant 0 : index
    %c0_6 = arith.constant 0 : index
    %c0_7 = arith.constant 0 : index
    %4 = vector.load %arg3[%c0_5, %c0_6, %c0_7] : memref<1x16x32xf32, #tpu.memory_space<vmem>>, vector<1x16x32xf32>
    %5 = vector.shape_cast %4 : vector<1x16x32xf32> to vector<16x32xf32>
    %c640 = arith.constant 640 : index
    %c0_8 = arith.constant 0 : index
    %6 = vector.load %arg5[%c640, %c0_8] : memref<650x32xf32, #tpu.memory_space<vmem>>, vector<7x32xf32>
    %7 = vector.extract_strided_slice %6 {offsets = [0, 0], sizes = [1, 32], strides = [1, 1]} : vector<7x32xf32> to vector<1x32xf32>
    %8 = vector.extract_strided_slice %6 {offsets = [1, 0], sizes = [1, 32], strides = [1, 1]} : vector<7x32xf32> to vector<1x32xf32>
    %9 = vector.extract_strided_slice %6 {offsets = [2, 0], sizes = [1, 32], strides = [1, 1]} : vector<7x32xf32> to vector<1x32xf32>
    %10 = vector.extract_strided_slice %6 {offsets = [3, 0], sizes = [1, 32], strides = [1, 1]} : vector<7x32xf32> to vector<1x32xf32>
    %11 = vector.extract_strided_slice %6 {offsets = [4, 0], sizes = [1, 32], strides = [1, 1]} : vector<7x32xf32> to vector<1x32xf32>
    %12 = vector.extract_strided_slice %6 {offsets = [5, 0], sizes = [1, 32], strides = [1, 1]} : vector<7x32xf32> to vector<1x32xf32>
    %13 = vector.extract_strided_slice %6 {offsets = [6, 0], sizes = [1, 32], strides = [1, 1]} : vector<7x32xf32> to vector<1x32xf32>
    %c0_9 = arith.constant 0 : index
    %c0_10 = arith.constant 0 : index
    %14 = vector.load %arg5[%c0_9, %c0_10] : memref<650x32xf32, #tpu.memory_space<vmem>>, vector<96x32xf32>
    %cst = arith.constant dense<0.000000e+00> : vector<1x32xf32>
    %15 = tpu.matmul %1, %14, %cst {dimension_numbers = #tpu.dot_dimension_numbers<[1], [0], [0], [1], [0, 0, 1, 1], [], []>} : vector<1x96xf32>, vector<96x32xf32>, vector<1x32xf32> -> vector<1x32xf32>
    %16 = arith.addf %15, %7 : vector<1x32xf32>
    %cst_11 = arith.constant 5.000000e-01 : f32
    %17 = vector.broadcast %cst_11 : f32 to vector<1x32xf32>
    %18 = arith.mulf %17, %16 : vector<1x32xf32>
    %cst_12 = arith.constant 0.707106769 : f32
    %19 = vector.broadcast %cst_12 : f32 to vector<1x32xf32>
    %20 = arith.mulf %16, %19 : vector<1x32xf32>
    %21 = math.erf %20 : vector<1x32xf32>
    %cst_13 = arith.constant 1.000000e+00 : f32
    %22 = vector.broadcast %cst_13 : f32 to vector<1x32xf32>
    %23 = arith.addf %22, %21 : vector<1x32xf32>
    %24 = arith.mulf %18, %23 : vector<1x32xf32>
    %c96 = arith.constant 96 : index
    %c0_14 = arith.constant 0 : index
    %25 = vector.load %arg5[%c96, %c0_14] : memref<650x32xf32, #tpu.memory_space<vmem>>, vector<32x32xf32>
    %cst_15 = arith.constant dense<0.000000e+00> : vector<1x32xf32>
    %26 = tpu.matmul %24, %25, %cst_15 {dimension_numbers = #tpu.dot_dimension_numbers<[1], [0], [0], [1], [0, 0, 1, 1], [], []>} : vector<1x32xf32>, vector<32x32xf32>, vector<1x32xf32> -> vector<1x32xf32>
    %27 = arith.addf %26, %8 : vector<1x32xf32>
    %28 = arith.addf %27, %3 : vector<1x32xf32>
    %cst_16 = arith.constant dense<0.000000e+00> : vector<1xf32>
    %29 = vector.multi_reduction <add>, %28, %cst_16 [1] : vector<1x32xf32> to vector<1xf32>
    %30 = vector.shape_cast %29 : vector<1xf32> to vector<1x1xf32>
    %cst_17 = arith.constant 3.200000e+01 : f32
    %31 = vector.broadcast %cst_17 : f32 to vector<1x1xf32>
    %32 = arith.divf %30, %31 : vector<1x1xf32>
    %33 = vector.broadcast %32 : vector<1x1xf32> to vector<1x32xf32>
    %34 = arith.subf %28, %33 : vector<1x32xf32>
    %35 = arith.mulf %34, %34 : vector<1x32xf32>
    %cst_18 = arith.constant dense<0.000000e+00> : vector<1xf32>
    %36 = vector.multi_reduction <add>, %35, %cst_18 [1] : vector<1x32xf32> to vector<1xf32>
    %37 = vector.shape_cast %36 : vector<1xf32> to vector<1x1xf32>
    %cst_19 = arith.constant 3.200000e+01 : f32
    %38 = vector.broadcast %cst_19 : f32 to vector<1x1xf32>
    %39 = arith.divf %37, %38 : vector<1x1xf32>
    %40 = vector.broadcast %32 : vector<1x1xf32> to vector<1x32xf32>
    %41 = arith.subf %28, %40 : vector<1x32xf32>
    %cst_20 = arith.constant 9.99999974E-6 : f32
    %42 = vector.broadcast %cst_20 : f32 to vector<1x1xf32>
    %43 = arith.addf %39, %42 : vector<1x1xf32>
    %44 = math.rsqrt %43 : vector<1x1xf32>
    %45 = vector.broadcast %44 : vector<1x1xf32> to vector<1x32xf32>
    %46 = arith.mulf %41, %45 : vector<1x32xf32>
    %47 = arith.mulf %46, %9 : vector<1x32xf32>
    %48 = arith.addf %47, %10 : vector<1x32xf32>
    %cst_21 = arith.constant dense<0.000000e+00> : vector<16xf32>
    %49 = vector.multi_reduction <add>, %5, %cst_21 [1] : vector<16x32xf32> to vector<16xf32>
    %50 = vector.shape_cast %49 : vector<16xf32> to vector<16x1xf32>
    %cst_22 = arith.constant 3.200000e+01 : f32
    %51 = vector.broadcast %cst_22 : f32 to vector<16x1xf32>
    %52 = arith.divf %50, %51 : vector<16x1xf32>
    %53 = vector.broadcast %52 : vector<16x1xf32> to vector<16x32xf32>
    %54 = arith.subf %5, %53 : vector<16x32xf32>
    %55 = arith.mulf %54, %54 : vector<16x32xf32>
    %cst_23 = arith.constant dense<0.000000e+00> : vector<16xf32>
    %56 = vector.multi_reduction <add>, %55, %cst_23 [1] : vector<16x32xf32> to vector<16xf32>
    %57 = vector.shape_cast %56 : vector<16xf32> to vector<16x1xf32>
    %cst_24 = arith.constant 3.200000e+01 : f32
    %58 = vector.broadcast %cst_24 : f32 to vector<16x1xf32>
    %59 = arith.divf %57, %58 : vector<16x1xf32>
    %60 = vector.broadcast %52 : vector<16x1xf32> to vector<16x32xf32>
    %61 = arith.subf %5, %60 : vector<16x32xf32>
    %cst_25 = arith.constant 9.99999974E-6 : f32
    %62 = vector.broadcast %cst_25 : f32 to vector<16x1xf32>
    %63 = arith.addf %59, %62 : vector<16x1xf32>
    %64 = math.rsqrt %63 : vector<16x1xf32>
    %65 = vector.broadcast %64 : vector<16x1xf32> to vector<16x32xf32>
    %66 = arith.mulf %61, %65 : vector<16x32xf32>
    %67 = vector.broadcast %11 : vector<1x32xf32> to vector<16x32xf32>
    %68 = arith.mulf %66, %67 : vector<16x32xf32>
    %69 = vector.broadcast %12 : vector<1x32xf32> to vector<16x32xf32>
    %70 = arith.addf %68, %69 : vector<16x32xf32>
    %c0_26 = arith.constant 0 : index
    %c0_27 = arith.constant 0 : index
    %71 = vector.load %arg4[%c0_26, %c0_27] : memref<80x16xf32, #tpu.memory_space<vmem>>, vector<80x16xf32>
    %cst_28 = arith.constant dense<0.000000e+00> : vector<80x32xf32>
    %72 = tpu.matmul %71, %70, %cst_28 {dimension_numbers = #tpu.dot_dimension_numbers<[1], [0], [0], [1], [0, 0, 1, 1], [], []>} : vector<80x16xf32>, vector<16x32xf32>, vector<80x32xf32> -> vector<80x32xf32>
    %73 = vector.extract_strided_slice %72 {offsets = [0, 0], sizes = [16, 32], strides = [1, 1]} : vector<80x32xf32> to vector<16x32xf32>
    %c160 = arith.constant 160 : index
    %c0_29 = arith.constant 0 : index
    %74 = vector.load %arg5[%c160, %c0_29] : memref<650x32xf32, #tpu.memory_space<vmem>>, vector<32x32xf32>
    %cst_30 = arith.constant dense<0.000000e+00> : vector<16x32xf32>
    %75 = tpu.matmul %73, %74, %cst_30 {dimension_numbers = #tpu.dot_dimension_numbers<[1], [0], [0], [1], [0, 0, 1, 1], [], []>} : vector<16x32xf32>, vector<32x32xf32>, vector<16x32xf32> -> vector<16x32xf32>
    %76 = vector.extract_strided_slice %72 {offsets = [16, 0], sizes = [16, 32], strides = [1, 1]} : vector<80x32xf32> to vector<16x32xf32>
    %c192 = arith.constant 192 : index
    %c0_31 = arith.constant 0 : index
    %77 = vector.load %arg5[%c192, %c0_31] : memref<650x32xf32, #tpu.memory_space<vmem>>, vector<32x32xf32>
    %cst_32 = arith.constant dense<0.000000e+00> : vector<16x32xf32>
    %78 = tpu.matmul %76, %77, %cst_32 {dimension_numbers = #tpu.dot_dimension_numbers<[1], [0], [0], [1], [0, 0, 1, 1], [], []>} : vector<16x32xf32>, vector<32x32xf32>, vector<16x32xf32> -> vector<16x32xf32>
    %79 = arith.addf %75, %78 : vector<16x32xf32>
    %80 = vector.extract_strided_slice %72 {offsets = [32, 0], sizes = [16, 32], strides = [1, 1]} : vector<80x32xf32> to vector<16x32xf32>
    %c224 = arith.constant 224 : index
    %c0_33 = arith.constant 0 : index
    %81 = vector.load %arg5[%c224, %c0_33] : memref<650x32xf32, #tpu.memory_space<vmem>>, vector<32x32xf32>
    %cst_34 = arith.constant dense<0.000000e+00> : vector<16x32xf32>
    %82 = tpu.matmul %80, %81, %cst_34 {dimension_numbers = #tpu.dot_dimension_numbers<[1], [0], [0], [1], [0, 0, 1, 1], [], []>} : vector<16x32xf32>, vector<32x32xf32>, vector<16x32xf32> -> vector<16x32xf32>
    %83 = arith.addf %79, %82 : vector<16x32xf32>
    %84 = vector.extract_strided_slice %72 {offsets = [48, 0], sizes = [16, 32], strides = [1, 1]} : vector<80x32xf32> to vector<16x32xf32>
    %c256 = arith.constant 256 : index
    %c0_35 = arith.constant 0 : index
    %85 = vector.load %arg5[%c256, %c0_35] : memref<650x32xf32, #tpu.memory_space<vmem>>, vector<32x32xf32>
    %cst_36 = arith.constant dense<0.000000e+00> : vector<16x32xf32>
    %86 = tpu.matmul %84, %85, %cst_36 {dimension_numbers = #tpu.dot_dimension_numbers<[1], [0], [0], [1], [0, 0, 1, 1], [], []>} : vector<16x32xf32>, vector<32x32xf32>, vector<16x32xf32> -> vector<16x32xf32>
    %87 = arith.addf %83, %86 : vector<16x32xf32>
    %88 = vector.extract_strided_slice %72 {offsets = [64, 0], sizes = [16, 32], strides = [1, 1]} : vector<80x32xf32> to vector<16x32xf32>
    %c288 = arith.constant 288 : index
    %c0_37 = arith.constant 0 : index
    %89 = vector.load %arg5[%c288, %c0_37] : memref<650x32xf32, #tpu.memory_space<vmem>>, vector<32x32xf32>
    %cst_38 = arith.constant dense<0.000000e+00> : vector<16x32xf32>
    %90 = tpu.matmul %88, %89, %cst_38 {dimension_numbers = #tpu.dot_dimension_numbers<[1], [0], [0], [1], [0, 0, 1, 1], [], []>} : vector<16x32xf32>, vector<32x32xf32>, vector<16x32xf32> -> vector<16x32xf32>
    %91 = arith.addf %87, %90 : vector<16x32xf32>
    %c647 = arith.constant 647 : index
    %c0_39 = arith.constant 0 : index
    %92 = vector.load %arg5[%c647, %c0_39] : memref<650x32xf32, #tpu.memory_space<vmem>>, vector<1x32xf32>
    %93 = vector.broadcast %92 : vector<1x32xf32> to vector<16x32xf32>
    %94 = arith.addf %91, %93 : vector<16x32xf32>
    %cst_40 = arith.constant 0.000000e+00 : f32
    %95 = vector.broadcast %cst_40 : f32 to vector<16x32xf32>
    %96 = arith.maximumf %94, %95 : vector<16x32xf32>
    %cst_41 = arith.constant dense<0.000000e+00> : vector<80x32xf32>
    %97 = tpu.matmul %71, %96, %cst_41 {dimension_numbers = #tpu.dot_dimension_numbers<[1], [0], [0], [1], [0, 0, 1, 1], [], []>} : vector<80x16xf32>, vector<16x32xf32>, vector<80x32xf32> -> vector<80x32xf32>
    %98 = vector.extract_strided_slice %97 {offsets = [0, 0], sizes = [16, 32], strides = [1, 1]} : vector<80x32xf32> to vector<16x32xf32>
    %c320 = arith.constant 320 : index
    %c0_42 = arith.constant 0 : index
    %99 = vector.load %arg5[%c320, %c0_42] : memref<650x32xf32, #tpu.memory_space<vmem>>, vector<32x32xf32>
    %cst_43 = arith.constant dense<0.000000e+00> : vector<16x32xf32>
    %100 = tpu.matmul %98, %99, %cst_43 {dimension_numbers = #tpu.dot_dimension_numbers<[1], [0], [0], [1], [0, 0, 1, 1], [], []>} : vector<16x32xf32>, vector<32x32xf32>, vector<16x32xf32> -> vector<16x32xf32>
    %101 = vector.extract_strided_slice %97 {offsets = [16, 0], sizes = [16, 32], strides = [1, 1]} : vector<80x32xf32> to vector<16x32xf32>
    %c352 = arith.constant 352 : index
    %c0_44 = arith.constant 0 : index
    %102 = vector.load %arg5[%c352, %c0_44] : memref<650x32xf32, #tpu.memory_space<vmem>>, vector<32x32xf32>
    %cst_45 = arith.constant dense<0.000000e+00> : vector<16x32xf32>
    %103 = tpu.matmul %101, %102, %cst_45 {dimension_numbers = #tpu.dot_dimension_numbers<[1], [0], [0], [1], [0, 0, 1, 1], [], []>} : vector<16x32xf32>, vector<32x32xf32>, vector<16x32xf32> -> vector<16x32xf32>
    %104 = arith.addf %100, %103 : vector<16x32xf32>
    %105 = vector.extract_strided_slice %97 {offsets = [32, 0], sizes = [16, 32], strides = [1, 1]} : vector<80x32xf32> to vector<16x32xf32>
    %c384 = arith.constant 384 : index
    %c0_46 = arith.constant 0 : index
    %106 = vector.load %arg5[%c384, %c0_46] : memref<650x32xf32, #tpu.memory_space<vmem>>, vector<32x32xf32>
    %cst_47 = arith.constant dense<0.000000e+00> : vector<16x32xf32>
    %107 = tpu.matmul %105, %106, %cst_47 {dimension_numbers = #tpu.dot_dimension_numbers<[1], [0], [0], [1], [0, 0, 1, 1], [], []>} : vector<16x32xf32>, vector<32x32xf32>, vector<16x32xf32> -> vector<16x32xf32>
    %108 = arith.addf %104, %107 : vector<16x32xf32>
    %109 = vector.extract_strided_slice %97 {offsets = [48, 0], sizes = [16, 32], strides = [1, 1]} : vector<80x32xf32> to vector<16x32xf32>
    %c416 = arith.constant 416 : index
    %c0_48 = arith.constant 0 : index
    %110 = vector.load %arg5[%c416, %c0_48] : memref<650x32xf32, #tpu.memory_space<vmem>>, vector<32x32xf32>
    %cst_49 = arith.constant dense<0.000000e+00> : vector<16x32xf32>
    %111 = tpu.matmul %109, %110, %cst_49 {dimension_numbers = #tpu.dot_dimension_numbers<[1], [0], [0], [1], [0, 0, 1, 1], [], []>} : vector<16x32xf32>, vector<32x32xf32>, vector<16x32xf32> -> vector<16x32xf32>
    %112 = arith.addf %108, %111 : vector<16x32xf32>
    %113 = vector.extract_strided_slice %97 {offsets = [64, 0], sizes = [16, 32], strides = [1, 1]} : vector<80x32xf32> to vector<16x32xf32>
    %c448 = arith.constant 448 : index
    %c0_50 = arith.constant 0 : index
    %114 = vector.load %arg5[%c448, %c0_50] : memref<650x32xf32, #tpu.memory_space<vmem>>, vector<32x32xf32>
    %cst_51 = arith.constant dense<0.000000e+00> : vector<16x32xf32>
    %115 = tpu.matmul %113, %114, %cst_51 {dimension_numbers = #tpu.dot_dimension_numbers<[1], [0], [0], [1], [0, 0, 1, 1], [], []>} : vector<16x32xf32>, vector<32x32xf32>, vector<16x32xf32> -> vector<16x32xf32>
    %116 = arith.addf %112, %115 : vector<16x32xf32>
    %c648 = arith.constant 648 : index
    %c0_52 = arith.constant 0 : index
    %117 = vector.load %arg5[%c648, %c0_52] : memref<650x32xf32, #tpu.memory_space<vmem>>, vector<1x32xf32>
    %118 = vector.broadcast %117 : vector<1x32xf32> to vector<16x32xf32>
    %119 = arith.addf %116, %118 : vector<16x32xf32>
    %cst_53 = arith.constant 0.000000e+00 : f32
    %120 = vector.broadcast %cst_53 : f32 to vector<16x32xf32>
    %121 = arith.maximumf %119, %120 : vector<16x32xf32>
    %cst_54 = arith.constant dense<0.000000e+00> : vector<80x32xf32>
    %122 = tpu.matmul %71, %121, %cst_54 {dimension_numbers = #tpu.dot_dimension_numbers<[1], [0], [0], [1], [0, 0, 1, 1], [], []>} : vector<80x16xf32>, vector<16x32xf32>, vector<80x32xf32> -> vector<80x32xf32>
    %123 = vector.extract_strided_slice %122 {offsets = [0, 0], sizes = [16, 32], strides = [1, 1]} : vector<80x32xf32> to vector<16x32xf32>
    %c480 = arith.constant 480 : index
    %c0_55 = arith.constant 0 : index
    %124 = vector.load %arg5[%c480, %c0_55] : memref<650x32xf32, #tpu.memory_space<vmem>>, vector<32x32xf32>
    %cst_56 = arith.constant dense<0.000000e+00> : vector<16x32xf32>
    %125 = tpu.matmul %123, %124, %cst_56 {dimension_numbers = #tpu.dot_dimension_numbers<[1], [0], [0], [1], [0, 0, 1, 1], [], []>} : vector<16x32xf32>, vector<32x32xf32>, vector<16x32xf32> -> vector<16x32xf32>
    %126 = vector.extract_strided_slice %122 {offsets = [16, 0], sizes = [16, 32], strides = [1, 1]} : vector<80x32xf32> to vector<16x32xf32>
    %c512 = arith.constant 512 : index
    %c0_57 = arith.constant 0 : index
    %127 = vector.load %arg5[%c512, %c0_57] : memref<650x32xf32, #tpu.memory_space<vmem>>, vector<32x32xf32>
    %cst_58 = arith.constant dense<0.000000e+00> : vector<16x32xf32>
    %128 = tpu.matmul %126, %127, %cst_58 {dimension_numbers = #tpu.dot_dimension_numbers<[1], [0], [0], [1], [0, 0, 1, 1], [], []>} : vector<16x32xf32>, vector<32x32xf32>, vector<16x32xf32> -> vector<16x32xf32>
    %129 = arith.addf %125, %128 : vector<16x32xf32>
    %130 = vector.extract_strided_slice %122 {offsets = [32, 0], sizes = [16, 32], strides = [1, 1]} : vector<80x32xf32> to vector<16x32xf32>
    %c544 = arith.constant 544 : index
    %c0_59 = arith.constant 0 : index
    %131 = vector.load %arg5[%c544, %c0_59] : memref<650x32xf32, #tpu.memory_space<vmem>>, vector<32x32xf32>
    %cst_60 = arith.constant dense<0.000000e+00> : vector<16x32xf32>
    %132 = tpu.matmul %130, %131, %cst_60 {dimension_numbers = #tpu.dot_dimension_numbers<[1], [0], [0], [1], [0, 0, 1, 1], [], []>} : vector<16x32xf32>, vector<32x32xf32>, vector<16x32xf32> -> vector<16x32xf32>
    %133 = arith.addf %129, %132 : vector<16x32xf32>
    %134 = vector.extract_strided_slice %122 {offsets = [48, 0], sizes = [16, 32], strides = [1, 1]} : vector<80x32xf32> to vector<16x32xf32>
    %c576 = arith.constant 576 : index
    %c0_61 = arith.constant 0 : index
    %135 = vector.load %arg5[%c576, %c0_61] : memref<650x32xf32, #tpu.memory_space<vmem>>, vector<32x32xf32>
    %cst_62 = arith.constant dense<0.000000e+00> : vector<16x32xf32>
    %136 = tpu.matmul %134, %135, %cst_62 {dimension_numbers = #tpu.dot_dimension_numbers<[1], [0], [0], [1], [0, 0, 1, 1], [], []>} : vector<16x32xf32>, vector<32x32xf32>, vector<16x32xf32> -> vector<16x32xf32>
    %137 = arith.addf %133, %136 : vector<16x32xf32>
    %138 = vector.extract_strided_slice %122 {offsets = [64, 0], sizes = [16, 32], strides = [1, 1]} : vector<80x32xf32> to vector<16x32xf32>
    %c608 = arith.constant 608 : index
    %c0_63 = arith.constant 0 : index
    %139 = vector.load %arg5[%c608, %c0_63] : memref<650x32xf32, #tpu.memory_space<vmem>>, vector<32x32xf32>
    %cst_64 = arith.constant dense<0.000000e+00> : vector<16x32xf32>
    %140 = tpu.matmul %138, %139, %cst_64 {dimension_numbers = #tpu.dot_dimension_numbers<[1], [0], [0], [1], [0, 0, 1, 1], [], []>} : vector<16x32xf32>, vector<32x32xf32>, vector<16x32xf32> -> vector<16x32xf32>
    %141 = arith.addf %137, %140 : vector<16x32xf32>
    %c649 = arith.constant 649 : index
    %c0_65 = arith.constant 0 : index
    %142 = vector.load %arg5[%c649, %c0_65] : memref<650x32xf32, #tpu.memory_space<vmem>>, vector<1x32xf32>
    %143 = vector.broadcast %142 : vector<1x32xf32> to vector<16x32xf32>
    %144 = arith.addf %141, %143 : vector<16x32xf32>
    %cst_66 = arith.constant 0.000000e+00 : f32
    %145 = vector.broadcast %cst_66 : f32 to vector<16x32xf32>
    %146 = arith.maximumf %144, %145 : vector<16x32xf32>
    %c128 = arith.constant 128 : index
    %c0_67 = arith.constant 0 : index
    %147 = vector.load %arg5[%c128, %c0_67] : memref<650x32xf32, #tpu.memory_space<vmem>>, vector<32x32xf32>
    %cst_68 = arith.constant dense<0.000000e+00> : vector<1x32xf32>
    %148 = tpu.matmul %48, %147, %cst_68 {dimension_numbers = #tpu.dot_dimension_numbers<[1], [0], [0], [1], [0, 0, 1, 1], [], []>} : vector<1x32xf32>, vector<32x32xf32>, vector<1x32xf32> -> vector<1x32xf32>
    %149 = arith.addf %148, %13 : vector<1x32xf32>
    %cst_69 = arith.constant 0.000000e+00 : f32
    %150 = vector.broadcast %cst_69 : f32 to vector<1x32xf32>
    %151 = arith.maximumf %149, %150 : vector<1x32xf32>
    %cst_70 = arith.constant dense<0.000000e+00> : vector<16x32xf32>
    %152 = tpu.matmul %146, %147, %cst_70 {dimension_numbers = #tpu.dot_dimension_numbers<[1], [0], [0], [1], [0, 0, 1, 1], [], []>} : vector<16x32xf32>, vector<32x32xf32>, vector<16x32xf32> -> vector<16x32xf32>
    %153 = vector.broadcast %13 : vector<1x32xf32> to vector<16x32xf32>
    %154 = arith.addf %152, %153 : vector<16x32xf32>
    %cst_71 = arith.constant 0.000000e+00 : f32
    %155 = vector.broadcast %cst_71 : f32 to vector<16x32xf32>
    %156 = arith.maximumf %154, %155 : vector<16x32xf32>
    %157 = vector.broadcast %151 : vector<1x32xf32> to vector<16x32xf32>
    %158 = arith.mulf %157, %156 : vector<16x32xf32>
    %cst_72 = arith.constant dense<0.000000e+00> : vector<16xf32>
    %159 = vector.multi_reduction <add>, %158, %cst_72 [1] : vector<16x32xf32> to vector<16xf32>
    %160 = vector.shape_cast %159 : vector<16xf32> to vector<16x1xf32>
    %161 = math.tanh %160 : vector<16x1xf32>
    %162 = vector.broadcast %161 : vector<16x1xf32> to vector<16x32xf32>
    %163 = arith.mulf %162, %156 : vector<16x32xf32>
    %cst_73 = arith.constant dense<0.000000e+00> : vector<32xf32>
    %164 = vector.multi_reduction <add>, %163, %cst_73 [0] : vector<16x32xf32> to vector<32xf32>
    %165 = vector.shape_cast %164 : vector<32xf32> to vector<1x32xf32>
    %cst_74 = arith.constant 1.600000e+01 : f32
    %166 = vector.broadcast %cst_74 : f32 to vector<1x32xf32>
    %167 = arith.divf %165, %166 : vector<1x32xf32>
    %c0_75 = arith.constant 0 : index
    %c0_76 = arith.constant 0 : index
    %168 = vector.load %arg6[%c0_75, %c0_76] : memref<197x64xf32, #tpu.memory_space<vmem>>, vector<32x64xf32>
    %cst_77 = arith.constant dense<0.000000e+00> : vector<1x64xf32>
    %169 = tpu.matmul %48, %168, %cst_77 {dimension_numbers = #tpu.dot_dimension_numbers<[1], [0], [0], [1], [0, 0, 1, 1], [], []>} : vector<1x32xf32>, vector<32x64xf32>, vector<1x64xf32> -> vector<1x64xf32>
    %c32 = arith.constant 32 : index
    %c0_78 = arith.constant 0 : index
    %170 = vector.load %arg6[%c32, %c0_78] : memref<197x64xf32, #tpu.memory_space<vmem>>, vector<32x64xf32>
    %cst_79 = arith.constant dense<0.000000e+00> : vector<1x64xf32>
    %171 = tpu.matmul %167, %170, %cst_79 {dimension_numbers = #tpu.dot_dimension_numbers<[1], [0], [0], [1], [0, 0, 1, 1], [], []>} : vector<1x32xf32>, vector<32x64xf32>, vector<1x64xf32> -> vector<1x64xf32>
    %172 = arith.addf %169, %171 : vector<1x64xf32>
    %c192_80 = arith.constant 192 : index
    %c0_81 = arith.constant 0 : index
    %173 = vector.load %arg6[%c192_80, %c0_81] : memref<197x64xf32, #tpu.memory_space<vmem>>, vector<1x64xf32>
    %174 = arith.addf %172, %173 : vector<1x64xf32>
    %cst_82 = arith.constant 0.000000e+00 : f32
    %175 = vector.broadcast %cst_82 : f32 to vector<1x64xf32>
    %176 = arith.maximumf %174, %175 : vector<1x64xf32>
    %c64 = arith.constant 64 : index
    %c0_83 = arith.constant 0 : index
    %177 = vector.load %arg6[%c64, %c0_83] : memref<197x64xf32, #tpu.memory_space<vmem>>, vector<64x64xf32>
    %cst_84 = arith.constant dense<0.000000e+00> : vector<1x64xf32>
    %178 = tpu.matmul %176, %177, %cst_84 {dimension_numbers = #tpu.dot_dimension_numbers<[1], [0], [0], [1], [0, 0, 1, 1], [], []>} : vector<1x64xf32>, vector<64x64xf32>, vector<1x64xf32> -> vector<1x64xf32>
    %c193 = arith.constant 193 : index
    %c0_85 = arith.constant 0 : index
    %179 = vector.load %arg6[%c193, %c0_85] : memref<197x64xf32, #tpu.memory_space<vmem>>, vector<1x64xf32>
    %180 = arith.addf %178, %179 : vector<1x64xf32>
    %cst_86 = arith.constant 0.000000e+00 : f32
    %181 = vector.broadcast %cst_86 : f32 to vector<1x64xf32>
    %182 = arith.maximumf %180, %181 : vector<1x64xf32>
    %c128_87 = arith.constant 128 : index
    %c0_88 = arith.constant 0 : index
    %183 = vector.load %arg6[%c128_87, %c0_88] : memref<197x64xf32, #tpu.memory_space<vmem>>, vector<64x64xf32>
    %cst_89 = arith.constant dense<0.000000e+00> : vector<1x64xf32>
    %184 = tpu.matmul %182, %183, %cst_89 {dimension_numbers = #tpu.dot_dimension_numbers<[1], [0], [0], [1], [0, 0, 1, 1], [], []>} : vector<1x64xf32>, vector<64x64xf32>, vector<1x64xf32> -> vector<1x64xf32>
    %c194 = arith.constant 194 : index
    %c0_90 = arith.constant 0 : index
    %185 = vector.load %arg6[%c194, %c0_90] : memref<197x64xf32, #tpu.memory_space<vmem>>, vector<1x64xf32>
    %186 = arith.addf %184, %185 : vector<1x64xf32>
    %cst_91 = arith.constant 0.000000e+00 : f32
    %187 = vector.broadcast %cst_91 : f32 to vector<1x64xf32>
    %188 = arith.maximumf %186, %187 : vector<1x64xf32>
    %c195 = arith.constant 195 : index
    %c0_92 = arith.constant 0 : index
    %189 = vector.load %arg6[%c195, %c0_92] : memref<197x64xf32, #tpu.memory_space<vmem>>, vector<1x64xf32>
    %c196 = arith.constant 196 : index
    %c0_93 = arith.constant 0 : index
    %190 = vector.load %arg6[%c196, %c0_93] : memref<197x64xf32, #tpu.memory_space<vmem>>, vector<1x64xf32>
    %191 = arith.mulf %188, %189 : vector<1x64xf32>
    %cst_94 = arith.constant dense<0.000000e+00> : vector<1xf32>
    %192 = vector.multi_reduction <add>, %191, %cst_94 [1] : vector<1x64xf32> to vector<1xf32>
    %193 = vector.shape_cast %192 : vector<1xf32> to vector<1x1xf32>
    %194 = vector.extract_strided_slice %190 {offsets = [0, 0], sizes = [1, 1], strides = [1, 1]} : vector<1x64xf32> to vector<1x1xf32>
    %195 = arith.addf %193, %194 : vector<1x1xf32>
    %196 = vector.shape_cast %195 : vector<1x1xf32> to vector<1x1x1xf32>
    %c0_95 = arith.constant 0 : index
    %c0_96 = arith.constant 0 : index
    %c0_97 = arith.constant 0 : index
    %197 = vector.load %arg7[%c0_95, %c0_96, %c0_97] : memref<1x1x1xf32, #tpu.memory_space<vmem>>, vector<1x1x1xf32>
    tpu.vector_store %arg7[%c0_95, %c0_96, %c0_97], %196 {strides = array<i32>} : memref<1x1x1xf32, #tpu.memory_space<vmem>>, vector<1x1x1xf32>,
    return
  }
  func.func @transform_0(%arg0: i32) -> (i32, i32, i32) {
    %c0_i32 = arith.constant 0 : i32
    %c0_i32_0 = arith.constant 0 : i32
    %c0_i32_1 = arith.constant 0 : i32
    return %arg0, %c0_i32, %c0_i32_0 : i32, i32, i32
  }
  func.func @transform_1(%arg0: i32) -> (i32, i32, i32) {
    %c0_i32 = arith.constant 0 : i32
    %c0_i32_0 = arith.constant 0 : i32
    %c0_i32_1 = arith.constant 0 : i32
    return %arg0, %c0_i32, %c0_i32_0 : i32, i32, i32
  }
  func.func @transform_2(%arg0: i32) -> (i32, i32, i32) {
    %c0_i32 = arith.constant 0 : i32
    %c0_i32_0 = arith.constant 0 : i32
    %c0_i32_1 = arith.constant 0 : i32
    return %arg0, %c0_i32, %c0_i32_0 : i32, i32, i32
  }
  func.func @transform_3(%arg0: i32) -> (i32, i32) {
    %c0_i32 = arith.constant 0 : i32
    %c0_i32_0 = arith.constant 0 : i32
    %c0_i32_1 = arith.constant 0 : i32
    return %c0_i32, %c0_i32_0 : i32, i32
  }
  func.func @transform_4(%arg0: i32) -> (i32, i32) {
    %c0_i32 = arith.constant 0 : i32
    %c0_i32_0 = arith.constant 0 : i32
    %c0_i32_1 = arith.constant 0 : i32
    return %c0_i32, %c0_i32_0 : i32, i32
  }
  func.func @transform_5(%arg0: i32) -> (i32, i32) {
    %c0_i32 = arith.constant 0 : i32
    %c0_i32_0 = arith.constant 0 : i32
    %c0_i32_1 = arith.constant 0 : i32
    return %c0_i32, %c0_i32_0 : i32, i32
  }
  func.func @transform_6(%arg0: i32) -> (i32, i32, i32) {
    %c0_i32 = arith.constant 0 : i32
    %c0_i32_0 = arith.constant 0 : i32
    %c0_i32_1 = arith.constant 0 : i32
    return %arg0, %c0_i32, %c0_i32_0 : i32, i32, i32
  }
}

</mosaic_0001>

<bundles_post_ra>
// kernel: phar_dti_forward.1
= control target key start
LH: loop header
LB: loop body
LE: loop exit
PB: predicated region body
PF: predicated region fallthrough
CT: control target
= control target key end

     0   :  { %s3483_s21 = smov 0   ;;  %s4091_s0 = inlined_call_operand.vmem [shape: f32[2,1,96], index: 0, kind: input, shape index: {}]   ;;  %s4092_s1 = inlined_call_operand.vmem [shape: f32[2,1,32], index: 1, kind: input, shape index: {}]   ;;  %s4093_s2 = inlined_call_operand.vmem [shape: f32[2,16,32], index: 2, kind: input, shape index: {}]   ;;  %s4094_s3 = inlined_call_operand.vmem [shape: f32[80,16], index: 3, kind: input, shape index: {}]   ;;  %s4095_s4 = inlined_call_operand.vmem [shape: f32[650,32], index: 4, kind: input, shape index: {}]   ;;  %s4096_s5 = inlined_call_operand.vmem [shape: f32[197,64], index: 5, kind: input, shape index: {}]   ;;  %s4097_s6 = inlined_call_operand.vmem [shape: f32[2,1,1], index: 6, kind: output, shape index: {}]  }
   0x1 LB: > { %s2809_s22 = sadd.s32 4294967295, %s3444_s21   ;;  %p2813_p0 = scmp.ge.s32.totalorder %s3444_s21, 1  ;;  %s3444_s21 = sphi %s3483_s21, %s16_s21  }
   0x2   : > { %p228_p1 = scmp.lt.s32.totalorder %s3444_s21, 3 }
   0x4   : > { %p229_p2 = pnand %p2813_p0, %p228_p1 }
   0x5   : > { %p262_p3 = scmp.lt.s32.totalorder (!%p229_p2), %s2809_s22, 1 }
   0x6   : > { %232 = sbr.rel (%p229_p2) target bundleno = 2700 (0xa8c), region = 44 }
   0xb   : > { %v292_v0 = vld [vmem:[%s4095_s4 + $0x58] sm:$0xff]  ;;  %v3446_v1 = vmov 0.0   ;;  %v291_v2 = vld [vmem:[%s4095_s4 + $0x50] sm:$0xff]  ;;  %s4099_s22 = smov (!%p262_p3, %s2809_s22), 1  ;;  %vm3447_vm0 = vmmov 0   ;;  %v290_v3 = vld [vmem:[%s4095_s4 + $0x48] sm:$0xff]  ;;  %v501_v47 = vlaneseq }
   0xc   : > { %3074 = vmatprep.subr.mxu0 %v3446_v1  ;;  %3101 = vmatprep.subr.mxu1 %v3446_v1  ;;  %s2890_s29 = sshll.u32 %s4099_s22, 4  ;;  %vm379_vm1 = vcmask 261120   ;;  %v289_v4 = vld [vmem:[%s4095_s4 + $0x40] sm:$0xff]  ;;  %v288_v8 = vld [vmem:[%s4095_s4 + $0x38] sm:$0xff]  ;;  %v287_v9 = vld [vmem:[%s4095_s4 + $0x30] sm:$0xff]  ;;  %vm293_vm2 = vcmask 785408   ;;  %s267_s16 = scalar_lea.vmem %s4092_s1, %s4099_s22 }
   0xd   : > { %3075 = vmatpush3.msra.mxu0 %v292_v0  ;;  %3098 = vmatprep.mubr.msk.f32.mxu0 %vm3447_vm0, %v3446_v1  ;;  %s272_s10 = scalar_lea.vmem %s4093_s2, %s2890_s29  ;;  %v286_v11 = vld [vmem:[%s4095_s4 + $0x28] sm:$0xff]  ;;  %v285_v12 = vld [vmem:[%s4095_s4 + $0x20] sm:$0xff]  ;;  %v284_v13 = vld [vmem:[%s4095_s4 + $0x18] sm:$0xff]  ;;  %s264_s29 = scalar_lea.vmem %s4091_s0, %s4099_s22  ;;  %vm523_vm3 = vcmask 130048   ;;  %v3587_v49 = vshrl.u32 %v501_v47, 7  ;;  %vm454_vm4 = vcmask 253952  }
   0xe   : > { %3076 = vmatprep.subr.mxu0 %v3446_v1  ;;  %3109 = vmatprep.mubr.msk.f32.mxu1 %vm3447_vm0, %v3446_v1  ;;  %v279_v5 = vld [vmem:[%s272_s10 + $0x8] sm:$0xff]  ;;  %v278_v6 = vld [vmem:[%s272_s10] sm:$0xff]  ;;  %v283_v14 = vld [vmem:[%s4095_s4 + $0x10] sm:$0xff]  ;;  %vm2576_vm5 = vcmask 523264   ;;  %vm2737_vm6 = vcmask 516096   ;;  %s275_s15 = scalar_lea.vmem %s4097_s6, %s4099_s22  ;;  %vm2742_vm7 = vcmask 0  }
   0xf   : > { %3077 = vmatpush3.msra.mxu0 %v291_v2  ;;  %v478_v7 = vsel %vm379_vm1, %v279_v5, 0.0  ;;  %v475_v10 = vsel %vm379_vm1, %v278_v6, 0.0  ;;  %v282_v15 = vld [vmem:[%s4095_s4 + $0x8] sm:$0xff]  ;;  %v281_v16 = vld [vmem:[%s4095_s4] sm:$0xff]  ;;  %v375_v18 = vld [vmem:[%s4095_s4 + $0x78] sm:$0xff]  ;;  %v503_v50 = vsub.s32 4, %v3587_v49 }
  0x10   : > { %3078 = vmatprep.subr.mxu0 %v3446_v1  ;;  %479 = vadd.xlane.f32.xlu0 %v478_v7  ;;  %v276_v17 = vld [vmem:[%s264_s29] sm:$0x1]  ;;  %v374_v19 = vld [vmem:[%s4095_s4 + $0x70] sm:$0xff]  ;;  %v373_v20 = vld [vmem:[%s4095_s4 + $0x68] sm:$0xff]  ;;  %v509_v51 = vsub.s32 5, %v3587_v49 }
  0x11   : > { %3079 = vmatpush3.msra.mxu0 %v290_v3  ;;  %3102 = vmatpush3.msra.mxu1 %v375_v18  ;;  %v372_v21 = vld [vmem:[%s4095_s4 + $0x60] sm:$0xff]  ;;  %v676_v56 = vld [vmem:[%s4095_s4 + $0xd8] sm:$0xff]  ;;  %v3599_v63 = vld [vmem:[%s4094_s3 + $0x8] sm:$0xff] }
  0x12   : > { %3080 = vmatprep.subr.mxu0 %v3446_v1  ;;  %3103 = vmatprep.subr.mxu1 %v3446_v1  ;;  %v3576_v32 = vld [vmem:[%s4095_s4 + $0x280] sm:$0x7f]  ;;  %v672_v0 = vld [vmem:[%s4095_s4 + $0xb8] sm:$0xff]  ;;  %v3607_v2 = vld [vmem:[%s4094_s3 + $0x10] sm:$0xff] }
  0x13   : > { %3081 = vmatpush3.msra.mxu0 %v289_v4  ;;  %3104 = vmatpush3.msra.mxu1 %v374_v19  ;;  %v3582_v41 = vld [vmem:[%s4094_s3] sm:$0xff]  ;;  %v504_v52 = vrot.slane %v3576_v32, %v503_v50  ;;  %v510_v55 = vrot.slane %v3576_v32, %v509_v51  ;;  %v671_v3 = vld [vmem:[%s4095_s4 + $0xb0] sm:$0xff]  ;;  %v3619_v4 = vld [vmem:[%s4094_s3 + $0x18] sm:$0xff]  ;;  %v377_v18 = vrot.slane %v3576_v32, 1 }
  0x14   : > { %3082 = vmatprep.subr.mxu0 %v3446_v1  ;;  %476 = vadd.xlane.f32.xlu0 %v475_v10  ;;  %v3638_v7 = vld [vmem:[%s4094_s3 + $0x30] sm:$0xff]  ;;  %v3661_v10 = vld [vmem:[%s4094_s3 + $0x48] sm:$0xff] }
  0x15   : > { %3083 = vmatpush3.msra.mxu0 %v288_v8  ;;  %3105 = vmatprep.subr.mxu1 %v3446_v1  ;;  %v3647_v8 = vld [vmem:[%s4094_s3 + $0x38] sm:$0xff] }
  0x16   : > { %3084 = vmatprep.subr.mxu0 %v3446_v1  ;;  %3106 = vmatpush3.msra.mxu1 %v373_v20  ;;  %v277_v20 = vld [vmem:[%s267_s16] sm:$0x1] }
  0x17   : > { %3085 = vmatpush3.msra.mxu0 %v287_v9  ;;  %3107 = vmatprep.subr.mxu1 %v3446_v1  ;;  %v3652_v9 = vld [vmem:[%s4094_s3 + $0x40] sm:$0xff] }
  0x18   : > { %3086 = vmatprep.subr.mxu0 %v3446_v1  ;;  %3108 = vmatpush3.msra.mxu1 %v372_v21 }
  0x19   : > { %3087 = vmatpush3.msra.mxu0 %v286_v11  ;;  %v670_v11 = vld [vmem:[%s4095_s4 + $0xa8] sm:$0xff] }
  0x1a   : > { %3088 = vmatprep.subr.mxu0 %v3446_v1 }
  0x1b   : > { %3089 = vmatpush3.msra.mxu0 %v285_v12  ;;  %v675_v12 = vld [vmem:[%s4095_s4 + $0xd0] sm:$0xff] }
  0x1c   : > { %3090 = vmatprep.subr.mxu0 %v3446_v1 }
  0x1d   : > { %3091 = vmatpush3.msra.mxu0 %v284_v13  ;;  %v669_v13 = vld [vmem:[%s4095_s4 + $0xa0] sm:$0xff] }
  0x1e   : > { %3092 = vmatprep.subr.mxu0 %v3446_v1 }
  0x1f   : > { %3093 = vmatpush3.msra.mxu0 %v283_v14  ;;  %v674_v14 = vld [vmem:[%s4095_s4 + $0xc8] sm:$0xff] }
  0x20   : > { %3094 = vmatprep.subr.mxu0 %v3446_v1 }
  0x21   : > { %3095 = vmatpush3.msra.mxu0 %v282_v15  ;;  %v673_v15 = vld [vmem:[%s4095_s4 + $0xc0] sm:$0xff] }
  0x22   : > { %3096 = vmatprep.subr.mxu0 %v3446_v1 }
  0x23   : > { %3097 = vmatpush3.msra.mxu0 %v281_v16  ;;  %v842_v16 = vld [vmem:[%s4095_s4 + $0xf8] sm:$0xff] }
  0x24   : > { %3099 = vmatmul.mubr.msk.f32.vlgmr.msra.gmra.mxu0 %vm293_vm2, %v276_v17  ;;  %3131 = vmatprep.subr.mxu0 %v676_v56  ;;  %v929_v17 = vld [vmem:[%s4095_s4 + $0x118] sm:$0xff] }
  0x25   : > { %3132 = vmatpush3.msra.mxu0 %v676_v56 }
  0x26   : > { %3133 = vmatprep.subr.mxu0 %v675_v12 }
  0x27   : > { %3134 = vmatpush3.msra.mxu0 %v675_v12 }
  0x28   : > { %3135 = vmatprep.subr.mxu0 %v674_v14 }
  0x29   : > { %3136 = vmatpush3.msra.mxu0 %v674_v14  ;;  %v2838_v14 = vld [vmem:[%s4095_s4 + $0x287] ss:$0 sm:$0xff] }
  0x2a   : > { %3137 = vmatprep.subr.mxu0 %v673_v15 }
  0x2b   : > { %3138 = vmatpush3.msra.mxu0 %v673_v15 }
  0x2c   : > { %3153 = vmatprep.subr.mxu0 %v842_v16 }
  0x99   : > { %v480_v22 = vpop.xlane.xlu0 %479 }
  0x9a   : > { %v482_v23 = vmul.f32 0.03125, %v480_v22 }
  0x9c   : > { %v484_v24 = vsub.f32 %v279_v5, %v482_v23  ;;  %v3624_v5 = vld [vmem:[%s4094_s3 + $0x20] sm:$0xff] }
  0x9d   : > { %v477_v25 = vpop.xlane.xlu0 %476 }
  0x9e   : > { %v481_v26 = vmul.f32 0.03125, %v477_v25  ;;  %v486_v27 = vmul.f32 %v484_v24, %v484_v24 }
  0xa0   : > { %v483_v28 = vsub.f32 %v278_v6, %v481_v26  ;;  %v490_v29 = vsel %vm379_vm1, %v486_v27, 0.0  ;;  %v3633_v6 = vld [vmem:[%s4094_s3 + $0x28] sm:$0xff]  ;;  %v928_v27 = vld [vmem:[%s4095_s4 + $0x110] sm:$0xff] }
  0xa1   : > { %491 = vadd.xlane.f32.xlu1 %v490_v29  ;;  %v927_v29 = vld [vmem:[%s4095_s4 + $0x108] sm:$0xff] }
  0xa2   : > { %v485_v30 = vmul.f32 %v483_v28, %v483_v28 }
  0xa4   : > { %v487_v31 = vsel %vm379_vm1, %v485_v30, 0.0 }
  0xa5   : > { %488 = vadd.xlane.f32.xlu1 %v487_v31  ;;  %v841_v31 = vld [vmem:[%s4095_s4 + $0xf0] sm:$0xff] }
  0xe4   : > { %v363_v33 = vpop.f32.mrf.mxu0 }
  0xe5   : > { %v364_v34 = vadd.f32 %v363_v33, %v3576_v32  ;;  %v926_v33 = vld [vmem:[%s4095_s4 + $0x100] sm:$0xff] }
  0xe6   : > { %v3100_v35 = vpop.f32.mrf.mxu0 }
  0xe7   : > { %v368_v36 = vmul.f32 0.70710677, %v364_v34  ;;  %v367_v37 = vmul.f32 0.5, %v364_v34  ;;  %v840_v35 = vld [vmem:[%s4095_s4 + $0xe8] sm:$0xff] }
  0xe9   : > { %3426 = verf.f32 %v368_v36 }
  0xf6   : > { %v3427_v38 = vpop.eup %3426 }
  0xf7   : > { %v370_v39 = vadd.f32 1.0, %v3427_v38 }
  0xf9   : > { %v371_v40 = vmul.f32 %v370_v39, %v367_v37  ;;  %v839_v37 = vld [vmem:[%s4095_s4 + $0xe0] sm:$0xff]  ;;  %v1016_v39 = vld [vmem:[%s4095_s4 + $0x138] sm:$0xff] }
  0xfb   : > { %3110 = vmatmul.mubr.msk.f32.vlgmr.msra.gmra.mxu1 %vm379_vm1, %v371_v40 }
  0xfc   : > { %3116 = vmatprep.mubr.msk.f32.mxu1 %vm523_vm3, %v3582_v41 }
 0x12a   : > { %v492_v42 = vpop.xlane.xlu1 %491 }
 0x12b   : > { %v494_v43 = vmul.f32 0.03125, %v492_v42  ;;  %v1015_v42 = vld [vmem:[%s4095_s4 + $0x130] sm:$0xff] }
 0x12d   : > { %v496_v44 = vadd.f32 1e-05, %v494_v43 }
 0x12e   : > { %v489_v45 = vpop.xlane.xlu1 %488 }
 0x12f   : > { %3428 = vrsqrt.f32 %v496_v44  ;;  %v493_v46 = vmul.f32 0.03125, %v489_v45  ;;  %v1014_v44 = vld [vmem:[%s4095_s4 + $0x128] sm:$0xff] }
 0x131   : > { %v495_v48 = vadd.f32 1e-05, %v493_v46  ;;  %v1013_v46 = vld [vmem:[%s4095_s4 + $0x120] sm:$0xff] }
 0x133   : > { %3430 = vrsqrt.f32 %v495_v48 }
 0x13c   : > { %v3429_v53 = vpop.eup %3428 }
 0x13d   : > { %v500_v54 = vmul.f32 %v3429_v53, %v484_v24  ;;  %v1231_v53 = vld [vmem:[%s4095_s4 + $0x178] sm:$0xff] }
 0x13f   : > { %v506_v57 = vmul.f32 %v504_v52, %v500_v54 }
 0x140   : > { %v3431_v58 = vpop.eup %3430 }
 0x141   : > { %v512_v59 = vadd.f32 %v510_v55, %v506_v57  ;;  %v499_v60 = vmul.f32 %v3431_v58, %v483_v28 }
 0x143   : > { %3112 = vmatprep.subr.mxu1 %v512_v59  ;;  %v505_v61 = vmul.f32 %v504_v52, %v499_v60 }
 0x144   : > { %3113 = vmatpush3.msra.mxu1 %v512_v59 }
 0x145   : > { %v511_v62 = vadd.f32 %v510_v55, %v505_v61 }
 0x147   : > { %3114 = vmatprep.subr.mxu1 %v511_v62 }
 0x148   : > { %3115 = vmatpush3.msra.mxu1 %v511_v62 }
 0x149   : > { %3117 = vmatmul.mubr.msk.f32.vlgmr.msra.gmra.mxu1 %vm523_vm3, %v3599_v63  ;;  %3142 = vmatprep.subr.mxu1 %v672_v0 }
 0x14a   : > { %3119 = vmatprep.mubr.msk.f32.mxu1 %vm523_vm3, %v3607_v2  ;;  %3143 = vmatpush3.msra.mxu1 %v672_v0 }
 0x14b   : > { %3144 = vmatprep.subr.mxu1 %v671_v3 }
 0x14c   : > { %3145 = vmatpush3.msra.mxu1 %v671_v3 }
 0x14d   : > { %3120 = vmatmul.mubr.msk.f32.gmra.mxu1 %vm523_vm3, %v3619_v4  ;;  %3146 = vmatprep.subr.mxu1 %v670_v11 }
 0x14e   : > { %3122 = vmatprep.mubr.msk.f32.mxu1 %vm523_vm3, %v3624_v5  ;;  %3147 = vmatpush3.msra.mxu1 %v670_v11 }
 0x14f   : > { %3148 = vmatprep.subr.mxu1 %v669_v13 }
 0x150   : > { %3149 = vmatpush3.msra.mxu1 %v669_v13 }
 0x151   : > { %3123 = vmatmul.mubr.msk.f32.gmra.mxu1 %vm523_vm3, %v3633_v6  ;;  %3164 = vmatprep.subr.mxu1 %v929_v17 }
 0x152   : > { %3125 = vmatprep.mubr.msk.f32.mxu1 %vm523_vm3, %v3638_v7 }
 0x155   : > { %3126 = vmatmul.mubr.msk.f32.gmra.mxu1 %vm523_vm3, %v3647_v8 }
 0x156   : > { %3128 = vmatprep.mubr.msk.f32.mxu1 %vm523_vm3, %v3652_v9 }
 0x159   : > { %3129 = vmatmul.mubr.msk.f32.gmra.mxu1 %vm523_vm3, %v3661_v10 }
 0x1bb   : > { %v449_v19 = vpop.f32.mrf.mxu1 }
 0x1bc   : > { %v450_v21 = vadd.f32 %v449_v19, %v377_v18 }
 0x1bd   : > { %v3111_v22 = vpop.f32.mrf.mxu1 }
 0x1be   : > { %v453_v23 = vadd.f32 %v450_v21, %v277_v20 }
 0x1c0   : > { %v455_v24 = vsel %vm454_vm4, %v453_v23, 0.0 }
 0x1c1   : > { %456 = vadd.xlane.f32.xlu0 %v455_v24  ;;  %v1230_v24 = vld [vmem:[%s4095_s4 + $0x170] sm:$0xff] }
 0x209   : > { %v3118_v25 = vpop.f32.mrf.mxu1 }
 0x20b   : > { %v620_v26 = vpop.f32.mrf.mxu1 }
 0x20c   : > { %3150 = vmatprep.mubr.msk.f32.mxu1 %vm379_vm1, %v620_v26  ;;  %v1396_v26 = vld [vmem:[%s4095_s4 + $0x190] sm:$0xff] }
 0x20d   : > { %v3121_v28 = vpop.f32.mrf.mxu1  ;;  %3151 = vmatmul.mubr.msk.f32.vlgmr.msra.gmra.mxu1 %vm379_vm1, %v3118_v25  ;;  %v1229_v25 = vld [vmem:[%s4095_s4 + $0x168] sm:$0xff] }
 0x20e   : > { %3165 = vmatpush3.msra.mxu1 %v929_v17 }
 0x20f   : > { %v630_v30 = vpop.f32.mrf.mxu1  ;;  %3166 = vmatprep.subr.mxu1 %v928_v27 }
 0x210   : > { %3139 = vmatprep.mubr.msk.f32.mxu0 %vm379_vm1, %v630_v30  ;;  %3167 = vmatpush3.msra.mxu1 %v928_v27  ;;  %v1228_v27 = vld [vmem:[%s4095_s4 + $0x160] sm:$0xff] }
 0x211   : > { %v3124_v34 = vpop.f32.mrf.mxu1  ;;  %3140 = vmatmul.mubr.msk.f32.vlgmr.msra.gmra.mxu0 %vm379_vm1, %v3121_v28  ;;  %3168 = vmatprep.subr.mxu1 %v927_v29  ;;  %v1227_v28 = vld [vmem:[%s4095_s4 + $0x158] sm:$0xff]  ;;  %v1394_v30 = vld [vmem:[%s4095_s4 + $0x180] sm:$0xff] }
 0x212   : > { %3154 = vmatpush3.msra.mxu0 %v842_v16  ;;  %3169 = vmatpush3.msra.mxu1 %v927_v29  ;;  %v1395_v29 = vld [vmem:[%s4095_s4 + $0x188] sm:$0xff] }
 0x213   : > { %3155 = vmatprep.subr.mxu0 %v841_v31  ;;  %v640_v36 = vpop.f32.mrf.mxu1  ;;  %3170 = vmatprep.subr.mxu1 %v926_v33 }
 0x214   : > { %3156 = vmatpush3.msra.mxu0 %v841_v31  ;;  %3161 = vmatprep.mubr.msk.f32.mxu0 %vm379_vm1, %v640_v36  ;;  %v1571_v31 = vld [vmem:[%s4095_s4 + $0x1d8] sm:$0xff] }
 0x215   : > { %3157 = vmatprep.subr.mxu0 %v840_v35  ;;  %v3127_v38 = vpop.f32.mrf.mxu1  ;;  %3171 = vmatpush3.msra.mxu1 %v926_v33 }
 0x216   : > { %3158 = vmatpush3.msra.mxu0 %v840_v35 }
 0x217   : > { %3159 = vmatprep.subr.mxu0 %v839_v37  ;;  %v650_v40 = vpop.f32.mrf.mxu1 }
 0x218   : > { %3160 = vmatpush3.msra.mxu0 %v839_v37  ;;  %3172 = vmatprep.mubr.msk.f32.mxu1 %vm379_vm1, %v650_v40  ;;  %v1226_v37 = vld [vmem:[%s4095_s4 + $0x150] sm:$0xff] }
 0x219   : > { %3162 = vmatmul.mubr.msk.f32.vlgmr.msra.gmra.mxu0 %vm379_vm1, %v3124_v34  ;;  %3175 = vmatprep.subr.mxu0 %v1016_v39  ;;  %v3130_v43 = vpop.f32.mrf.mxu1 }
 0x21a   : > { %3173 = vmatmul.mubr.msk.f32.vlgmr.msra.gmra.mxu1 %vm379_vm1, %v3127_v38  ;;  %3176 = vmatpush3.msra.mxu0 %v1016_v39  ;;  %v1225_v39 = vld [vmem:[%s4095_s4 + $0x148] sm:$0xff] }
 0x21b   : > { %3177 = vmatprep.subr.mxu0 %v1015_v42  ;;  %v660_v45 = vpop.f32.mrf.mxu1  ;;  %3190 = vmatprep.mubr.msk.f32.mxu1 %vm523_vm3, %v3582_v41 }
 0x21c   : > { %3178 = vmatpush3.msra.mxu0 %v1015_v42  ;;  %3183 = vmatprep.mubr.msk.f32.mxu0 %vm379_vm1, %v660_v45  ;;  %v1224_v42 = vld [vmem:[%s4095_s4 + $0x140] sm:$0xff]  ;;  %v1484_v45 = vld [vmem:[%s4095_s4 + $0x1b8] sm:$0xff] }
 0x21d   : > { %3179 = vmatprep.subr.mxu0 %v1014_v44 }
 0x21e   : > { %3180 = vmatpush3.msra.mxu0 %v1014_v44 }
 0x21f   : > { %3181 = vmatprep.subr.mxu0 %v1013_v46 }
 0x220   : > { %3182 = vmatpush3.msra.mxu0 %v1013_v46 }
 0x221   : > { %3184 = vmatmul.mubr.msk.f32.vlgmr.msra.gmra.mxu0 %vm379_vm1, %v3130_v43  ;;  %3205 = vmatprep.subr.mxu0 %v1231_v53  ;;  %v1570_v43 = vld [vmem:[%s4095_s4 + $0x1d0] sm:$0xff] }
 0x222   : > { %3206 = vmatpush3.msra.mxu0 %v1231_v53  ;;  %v1482_v53 = vld [vmem:[%s4095_s4 + $0x1a8] sm:$0xff] }
 0x223   : > { %3207 = vmatprep.subr.mxu0 %v1230_v24 }
 0x224   : > { %3208 = vmatpush3.msra.mxu0 %v1230_v24 }
 0x225   : > { %3209 = vmatprep.subr.mxu0 %v1229_v25 }
 0x226   : > { %3210 = vmatpush3.msra.mxu0 %v1229_v25  ;;  %v1952_v25 = vld [vmem:[%s4095_s4 + $0x238] sm:$0xff] }
 0x227   : > { %3211 = vmatprep.subr.mxu0 %v1228_v27 }
 0x228   : > { %3212 = vmatpush3.msra.mxu0 %v1228_v27 }
 0x229   : > { %3216 = vmatprep.subr.mxu0 %v1227_v28 }
 0x24a   : > { %v457_v47 = vpop.xlane.xlu0 %456 }
 0x24b   : > { %v459_v48 = vmul.f32 0.03125, %v457_v47  ;;  %v1569_v47 = vld [vmem:[%s4095_s4 + $0x1c8] sm:$0xff] }
 0x24d   : > { %v3734_v50 = vsub.f32 %v453_v23, %v459_v48  ;;  %v1397_v23 = vld [vmem:[%s4095_s4 + $0x198] sm:$0xff]  ;;  %v1483_v48 = vld [vmem:[%s4095_s4 + $0x1b0] sm:$0xff] }
 0x24f   : > { %v461_v51 = vmul.f32 %v3734_v50, %v3734_v50 }
 0x251   : > { %v462_v52 = vsel %vm454_vm4, %v461_v51, 0.0 }
 0x252   : > { %463 = vadd.xlane.f32.xlu1 %v462_v52  ;;  %v1568_v52 = vld [vmem:[%s4095_s4 + $0x1c0] sm:$0xff] }
 0x2cd   : > { %v3152_v55 = vpop.f32.mrf.mxu1 }
 0x2cf   : > { %v830_v57 = vpop.f32.mrf.mxu1 }
 0x2d1   : > { %v3141_v54 = vpop.f32.mrf.mxu0 }
 0x2d2   : > { %v836_v59 = vadd.f32 %v3152_v55, %v3141_v54  ;;  %v1481_v55 = vld [vmem:[%s4095_s4 + $0x1a0] sm:$0xff] }
 0x2d3   : > { %v749_v56 = vpop.f32.mrf.mxu0 }
 0x2d4   : > { %v831_v62 = vadd.f32 %v830_v57, %v749_v56  ;;  %v1786_v56 = vld [vmem:[%s4095_s4 + $0x218] sm:$0xff] }
 0x2d9   : > { %v3163_v58 = vpop.f32.mrf.mxu0 }
 0x2da   : > { %v3174_v60 = vpop.f32.mrf.mxu1  ;;  %v925_v0 = vadd.f32 %v3163_v58, %v836_v59 }
 0x2db   : > { %v915_v61 = vpop.f32.mrf.mxu0 }
 0x2dc   : > { %v924_v3 = vadd.f32 %v915_v61, %v831_v62  ;;  %v1002_v11 = vpop.f32.mrf.mxu1  ;;  %v1012_v12 = vadd.f32 %v3174_v60, %v925_v0 }
 0x2de   : > { %v1011_v15 = vadd.f32 %v1002_v11, %v924_v3 }
 0x2e1   : > { %v3185_v13 = vpop.f32.mrf.mxu0 }
 0x2e2   : > { %v1099_v16 = vadd.f32 %v3185_v13, %v1012_v12 }
 0x2e3   : > { %v1089_v17 = vpop.f32.mrf.mxu0 }
 0x2e4   : > { %v1106_v18 = vadd.f32 %v2838_v14, %v1099_v16  ;;  %v1098_v19 = vadd.f32 %v1089_v17, %v1011_v15  ;;  %v2859_v16 = vld [vmem:[%s4095_s4 + $0x288] ss:$0 sm:$0xff] }
 0x2e6   : > { %v1108_v20 = vmax.f32 %v1106_v18, 0.0  ;;  %v1105_v21 = vadd.f32 %v2838_v14, %v1098_v19 }
 0x2e8   : > { %v1107_v22 = vmax.f32 %v1105_v21, 0.0  ;;  %3186 = vmatprep.subr.mxu1 %v1108_v20 }
 0x2e9   : > { %3187 = vmatpush3.msra.mxu1 %v1108_v20 }
 0x2ea   : > { %3188 = vmatprep.subr.mxu1 %v1107_v22 }
 0x2eb   : > { %3189 = vmatpush3.msra.mxu1 %v1107_v22 }
 0x2ec   : > { %3191 = vmatmul.mubr.msk.f32.vlgmr.msra.gmra.mxu1 %vm523_vm3, %v3599_v63  ;;  %3227 = vmatprep.subr.mxu1 %v1397_v23 }
 0x2ed   : > { %3193 = vmatprep.mubr.msk.f32.mxu1 %vm523_vm3, %v3607_v2  ;;  %3228 = vmatpush3.msra.mxu1 %v1397_v23 }
 0x2ee   : > { %3229 = vmatprep.subr.mxu1 %v1396_v26 }
 0x2ef   : > { %3230 = vmatpush3.msra.mxu1 %v1396_v26 }
 0x2f0   : > { %3194 = vmatmul.mubr.msk.f32.gmra.mxu1 %vm523_vm3, %v3619_v4  ;;  %3231 = vmatprep.subr.mxu1 %v1395_v29 }
 0x2f1   : > { %3196 = vmatprep.mubr.msk.f32.mxu1 %vm523_vm3, %v3624_v5  ;;  %3232 = vmatpush3.msra.mxu1 %v1395_v29 }
 0x2f2   : > { %3233 = vmatprep.subr.mxu1 %v1394_v30 }
 0x2f3   : > { %3234 = vmatpush3.msra.mxu1 %v1394_v30 }
 0x2f4   : > { %3197 = vmatmul.mubr.msk.f32.gmra.mxu1 %vm523_vm3, %v3633_v6  ;;  %3249 = vmatprep.subr.mxu1 %v1571_v31 }
 0x2f5   : > { %3199 = vmatprep.mubr.msk.f32.mxu1 %vm523_vm3, %v3638_v7 }
 0x2f8   : > { %3200 = vmatmul.mubr.msk.f32.gmra.mxu1 %vm523_vm3, %v3647_v8 }
 0x2f9   : > { %3202 = vmatprep.mubr.msk.f32.mxu1 %vm523_vm3, %v3652_v9 }
 0x2fc   : > { %3203 = vmatmul.mubr.msk.f32.gmra.mxu1 %vm523_vm3, %v3661_v10 }
 0x3ac   : > { %v3192_v33 = vpop.f32.mrf.mxu1 }
 0x3ae   : > { %v1175_v34 = vpop.f32.mrf.mxu1 }
 0x3b0   : > { %v3195_v35 = vpop.f32.mrf.mxu1 }
 0x3b2   : > { %v1185_v36 = vpop.f32.mrf.mxu1 }
 0x3b3   : > { %3213 = vmatprep.mubr.msk.f32.mxu0 %vm379_vm1, %v1185_v36 }
 0x3b4   : > { %v3198_v38 = vpop.f32.mrf.mxu1  ;;  %3214 = vmatmul.mubr.msk.f32.vlgmr.msra.gmra.mxu0 %vm379_vm1, %v3195_v35  ;;  %v1780_v35 = vld [vmem:[%s4095_s4 + $0x1e8] sm:$0xff] }
 0x3b5   : > { %3217 = vmatpush3.msra.mxu0 %v1227_v28  ;;  %3224 = vmatprep.mubr.msk.f32.mxu0 %vm379_vm1, %v1175_v34 }
 0x3b6   : > { %3218 = vmatprep.subr.mxu0 %v1226_v37  ;;  %v1195_v40 = vpop.f32.mrf.mxu1 }
 0x3b7   : > { %3219 = vmatpush3.msra.mxu0 %v1226_v37  ;;  %3235 = vmatprep.mubr.msk.f32.mxu1 %vm379_vm1, %v1195_v40  ;;  %v1779_v37 = vld [vmem:[%s4095_s4 + $0x1e0] sm:$0xff]  ;;  %v2039_v40 = vld [vmem:[%s4095_s4 + $0x258] sm:$0xff] }
 0x3b8   : > { %3220 = vmatprep.subr.mxu0 %v1225_v39  ;;  %v3201_v44 = vpop.f32.mrf.mxu1  ;;  %3236 = vmatmul.mubr.msk.f32.vlgmr.msra.gmra.mxu1 %vm379_vm1, %v3198_v38  ;;  %v2125_v38 = vld [vmem:[%s4095_s4 + $0x270] sm:$0xff] }
 0x3b9   : > { %3221 = vmatpush3.msra.mxu0 %v1225_v39  ;;  %3250 = vmatpush3.msra.mxu1 %v1571_v31 }
 0x3ba   : > { %3222 = vmatprep.subr.mxu0 %v1224_v42  ;;  %v1205_v46 = vpop.f32.mrf.mxu1  ;;  %3251 = vmatprep.subr.mxu1 %v1570_v43 }
 0x3bb   : > { %3223 = vmatpush3.msra.mxu0 %v1224_v42  ;;  %3252 = vmatpush3.msra.mxu1 %v1570_v43  ;;  %v2124_v43 = vld [vmem:[%s4095_s4 + $0x268] sm:$0xff] }
 0x3bc   : > { %3225 = vmatmul.mubr.msk.f32.vlgmr.msra.gmra.mxu0 %vm379_vm1, %v3192_v33  ;;  %3238 = vmatprep.subr.mxu0 %v1484_v45  ;;  %v3204_v51 = vpop.f32.mrf.mxu1  ;;  %v1781_v33 = vld [vmem:[%s4095_s4 + $0x1f0] sm:$0xff] }
 0x3bd   : > { %3239 = vmatpush3.msra.mxu0 %v1484_v45  ;;  %3253 = vmatprep.subr.mxu1 %v1569_v47 }
 0x3be   : > { %3240 = vmatprep.subr.mxu0 %v1483_v48  ;;  %3254 = vmatpush3.msra.mxu1 %v1569_v47  ;;  %v1215_v54 = vpop.f32.mrf.mxu1  ;;  %v2123_v47 = vld [vmem:[%s4095_s4 + $0x260] sm:$0xff] }
 0x3bf   : > { %3241 = vmatpush3.msra.mxu0 %v1483_v48  ;;  %3246 = vmatprep.mubr.msk.f32.mxu0 %vm379_vm1, %v1205_v46  ;;  %v2037_v46 = vld [vmem:[%s4095_s4 + $0x248] sm:$0xff] }
 0x3c0   : > { %3255 = vmatprep.subr.mxu1 %v1568_v52  ;;  %3242 = vmatprep.subr.mxu0 %v1482_v53 }
 0x3c1   : > { %3256 = vmatpush3.msra.mxu1 %v1568_v52  ;;  %3257 = vmatprep.mubr.msk.f32.mxu1 %vm379_vm1, %v1215_v54  ;;  %v2036_v52 = vld [vmem:[%s4095_s4 + $0x240] sm:$0xff]  ;;  %v2222_v54 = vld [vmem:[%s4095_s4 + $0x98] sm:$0xff] }
 0x3c2   : > { %3243 = vmatpush3.msra.mxu0 %v1482_v53  ;;  %3258 = vmatmul.mubr.msk.f32.vlgmr.msra.gmra.mxu1 %vm379_vm1, %v3204_v51 }
 0x3c3   : > { %3244 = vmatprep.subr.mxu0 %v1481_v55  ;;  %3279 = vmatprep.subr.mxu1 %v1786_v56 }
 0x3c4   : > { %3245 = vmatpush3.msra.mxu0 %v1481_v55  ;;  %3280 = vmatpush3.msra.mxu1 %v1786_v56  ;;  %v469_v55 = vrot.slane %v3576_v32, 2  ;;  %v2220_v56 = vld [vmem:[%s4095_s4 + $0x88] sm:$0xff] }
 0x3c5   : > { %3247 = vmatmul.mubr.msk.f32.vlgmr.msra.gmra.mxu0 %vm379_vm1, %v3201_v44  ;;  %v2038_v44 = vld [vmem:[%s4095_s4 + $0x250] sm:$0xff] }
 0x3c6   : > { %3264 = vmatprep.mubr.msk.f32.mxu0 %vm523_vm3, %v3582_v41 }
 0x474   : > { %v3215_v57 = vpop.f32.mrf.mxu0 }
 0x476   : > { %v1304_v58 = vpop.f32.mrf.mxu0 }
 0x478   : > { %v3237_v60 = vpop.f32.mrf.mxu1 }
 0x47a   : > { %v1470_v3 = vpop.f32.mrf.mxu1 }
 0x47c   : > { %v3226_v59 = vpop.f32.mrf.mxu0 }
 0x47d   : > { %v1391_v62 = vadd.f32 %v3226_v59, %v3215_v57  ;;  %v2219_v59 = vld [vmem:[%s4095_s4 + $0x80] sm:$0xff] }
 0x47e   : > { %v1385_v61 = vpop.f32.mrf.mxu0 }
 0x47f   : > { %v1386_v0 = vadd.f32 %v1385_v61, %v1304_v58  ;;  %v1480_v11 = vadd.f32 %v3237_v60, %v1391_v62  ;;  %v472_v58 = vrot.slane %v3576_v32, 3 }
 0x481   : > { %v1479_v15 = vadd.f32 %v1470_v3, %v1386_v0 }
 0x482   : > { %v3259_v12 = vpop.f32.mrf.mxu1 }
 0x484   : > { %v1644_v19 = vpop.f32.mrf.mxu1 }
 0x485   : > { %v3248_v13 = vpop.f32.mrf.mxu0 }
 0x486   : > { %v1567_v14 = vadd.f32 %v3248_v13, %v1480_v11 }
 0x487   : > { %v1557_v41 = vpop.f32.mrf.mxu0 }
 0x488   : > { %v1654_v17 = vadd.f32 %v3259_v12, %v1567_v14  ;;  %v1566_v18 = vadd.f32 %v1557_v41, %v1479_v15 }
 0x48a   : > { %v1653_v20 = vadd.f32 %v1644_v19, %v1566_v18  ;;  %v1661_v21 = vadd.f32 %v2859_v16, %v1654_v17 }
 0x48c   : > { %v1663_v22 = vmax.f32 %v1661_v21, 0.0  ;;  %v1660_v23 = vadd.f32 %v2859_v16, %v1653_v20  ;;  %v2880_v21 = vld [vmem:[%s4095_s4 + $0x289] ss:$0 sm:$0xff] }
 0x48e   : > { %3260 = vmatprep.subr.mxu0 %v1663_v22  ;;  %v1662_v24 = vmax.f32 %v1660_v23, 0.0 }
 0x48f   : > { %3261 = vmatpush3.msra.mxu0 %v1663_v22 }
 0x490   : > { %3262 = vmatprep.subr.mxu0 %v1662_v24 }
 0x491   : > { %3263 = vmatpush3.msra.mxu0 %v1662_v24 }
 0x492   : > { %3265 = vmatmul.mubr.msk.f32.vlgmr.msra.gmra.mxu0 %vm523_vm3, %v3599_v63  ;;  %3301 = vmatprep.subr.mxu0 %v1952_v25  ;;  %v1785_v63 = vld [vmem:[%s4095_s4 + $0x210] sm:$0xff] }
 0x493   : > { %3267 = vmatprep.mubr.msk.f32.mxu0 %vm523_vm3, %v3607_v2  ;;  %3302 = vmatpush3.msra.mxu0 %v1952_v25  ;;  %v1784_v2 = vld [vmem:[%s4095_s4 + $0x208] sm:$0xff] }
 0x494   : > { %3281 = vmatprep.subr.mxu1 %v1785_v63 }
 0x495   : > { %3282 = vmatpush3.msra.mxu1 %v1785_v63 }
 0x496   : > { %3268 = vmatmul.mubr.msk.f32.gmra.mxu0 %vm523_vm3, %v3619_v4  ;;  %v1951_v4 = vld [vmem:[%s4095_s4 + $0x230] sm:$0xff]  ;;  %3283 = vmatprep.subr.mxu1 %v1784_v2 }
 0x497   : > { %3270 = vmatprep.mubr.msk.f32.mxu0 %vm523_vm3, %v3624_v5  ;;  %3303 = vmatprep.subr.mxu0 %v1951_v4  ;;  %v1783_v5 = vld [vmem:[%s4095_s4 + $0x200] sm:$0xff] }
 0x498   : > { %3284 = vmatpush3.msra.mxu1 %v1784_v2  ;;  %3304 = vmatpush3.msra.mxu0 %v1951_v4 }
 0x499   : > { %3285 = vmatprep.subr.mxu1 %v1783_v5 }
 0x49a   : > { %3271 = vmatmul.mubr.msk.f32.gmra.mxu0 %vm523_vm3, %v3633_v6  ;;  %3286 = vmatpush3.msra.mxu1 %v1783_v5  ;;  %v1782_v6 = vld [vmem:[%s4095_s4 + $0x1f8] sm:$0xff] }
 0x49b   : > { %3273 = vmatprep.mubr.msk.f32.mxu0 %vm523_vm3, %v3638_v7  ;;  %3290 = vmatprep.subr.mxu1 %v1782_v6  ;;  %v1950_v7 = vld [vmem:[%s4095_s4 + $0x228] sm:$0xff] }
 0x49c   : > { %3305 = vmatprep.subr.mxu0 %v1950_v7 }
 0x49d   : > { %3306 = vmatpush3.msra.mxu0 %v1950_v7  ;;  %v2416_v7 = vld [vmem:[%s4096_s5 + $0x18] sm:$0xff] }
 0x49e   : > { %3274 = vmatmul.mubr.msk.f32.gmra.mxu0 %vm523_vm3, %v3647_v8  ;;  %v1949_v8 = vld [vmem:[%s4095_s4 + $0x220] sm:$0xff] }
 0x49f   : > { %3276 = vmatprep.mubr.msk.f32.mxu0 %vm523_vm3, %v3652_v9  ;;  %3307 = vmatprep.subr.mxu0 %v1949_v8  ;;  %v2126_v9 = vld [vmem:[%s4095_s4 + $0x278] sm:$0xff] }
 0x4a0   : > { %3308 = vmatpush3.msra.mxu0 %v1949_v8  ;;  %v2415_v8 = vld [vmem:[%s4096_s5 + $0x10] sm:$0xff] }
 0x4a1   : > { %3323 = vmatprep.subr.mxu0 %v2126_v9 }
 0x4a2   : > { %3277 = vmatmul.mubr.msk.f32.gmra.mxu0 %vm523_vm3, %v3661_v10  ;;  %v464_v10 = vpop.xlane.xlu1 %463 }
 0x4a3   : > { %v465_v26 = vmul.f32 0.03125, %v464_v10  ;;  %v2413_v10 = vld [vmem:[%s4096_s5] sm:$0xff] }
 0x4a5   : > { %v466_v28 = vadd.f32 1e-05, %v465_v26  ;;  %v2223_v26 = vrot.slane %v3576_v32, 6 }
 0x4a7   : > { %3432 = vrsqrt.f32 %v466_v28 }
 0x4b4   : > { %v3433_v48 = vpop.eup %3432 }
 0x4b5   : > { %v468_v53 = vmul.f32 %v3433_v48, %v3734_v50  ;;  %v2221_v50 = vld [vmem:[%s4095_s4 + $0x90] sm:$0xff]  ;;  %v2417_v48 = vld [vmem:[%s4096_s5 + $0x20] sm:$0xff] }
 0x4b7   : > { %v471_v57 = vmul.f32 %v469_v55, %v468_v53 }
 0x4b9   : > { %v474_v60 = vadd.f32 %v472_v58, %v471_v57 }
 0x552   : > { %v3266_v27 = vpop.f32.mrf.mxu0 }
 0x554   : > { %v1730_v29 = vpop.f32.mrf.mxu0 }
 0x556   : > { %v3269_v30 = vpop.f32.mrf.mxu0 }
 0x558   : > { %v1740_v31 = vpop.f32.mrf.mxu0 }
 0x559   : > { %3287 = vmatprep.mubr.msk.f32.mxu1 %vm379_vm1, %v1740_v31  ;;  %v2388_v31 = vsub.s32 0, %v3587_v49 }
 0x55a   : > { %3288 = vmatmul.mubr.msk.f32.vlgmr.msra.gmra.mxu1 %vm379_vm1, %v3269_v30  ;;  %v3272_v34 = vpop.f32.mrf.mxu0 }
 0x55b   : > { %3291 = vmatpush3.msra.mxu1 %v1782_v6  ;;  %3298 = vmatprep.mubr.msk.f32.mxu1 %vm379_vm1, %v1730_v29 }
 0x55c   : > { %3292 = vmatprep.subr.mxu1 %v1781_v33  ;;  %v1750_v36 = vpop.f32.mrf.mxu0 }
 0x55d   : > { %3293 = vmatpush3.msra.mxu1 %v1781_v33  ;;  %3309 = vmatprep.mubr.msk.f32.mxu0 %vm379_vm1, %v1750_v36 }
 0x55e   : > { %3294 = vmatprep.subr.mxu1 %v1780_v35  ;;  %v3275_v39 = vpop.f32.mrf.mxu0  ;;  %3310 = vmatmul.mubr.msk.f32.vlgmr.msra.gmra.mxu0 %vm379_vm1, %v3272_v34 }
 0x55f   : > { %3295 = vmatpush3.msra.mxu1 %v1780_v35  ;;  %3324 = vmatpush3.msra.mxu0 %v2126_v9  ;;  %v2414_v9 = vld [vmem:[%s4096_s5 + $0x8] sm:$0xff] }
 0x560   : > { %3296 = vmatprep.subr.mxu1 %v1779_v37  ;;  %v1760_v42 = vpop.f32.mrf.mxu0  ;;  %3325 = vmatprep.subr.mxu0 %v2125_v38 }
 0x561   : > { %3297 = vmatpush3.msra.mxu1 %v1779_v37  ;;  %3326 = vmatpush3.msra.mxu0 %v2125_v38 }
 0x562   : > { %3299 = vmatmul.mubr.msk.f32.vlgmr.msra.gmra.mxu1 %vm379_vm1, %v3266_v27  ;;  %3312 = vmatprep.subr.mxu1 %v2039_v40  ;;  %v3278_v45 = vpop.f32.mrf.mxu0  ;;  %v2301_v27 = vsub.s32 6, %v3587_v49  ;;  %v2420_v49 = vld [vmem:[%s4096_s5 + $0x38] sm:$0xff] }
 0x563   : > { %3313 = vmatpush3.msra.mxu1 %v2039_v40  ;;  %3327 = vmatprep.subr.mxu0 %v2124_v43 }
 0x564   : > { %3314 = vmatprep.subr.mxu1 %v2038_v44  ;;  %3328 = vmatpush3.msra.mxu0 %v2124_v43  ;;  %v1770_v51 = vpop.f32.mrf.mxu0  ;;  %v2302_v29 = vrot.slane %v3576_v32, %v2301_v27 }
 0x565   : > { %3315 = vmatpush3.msra.mxu1 %v2038_v44  ;;  %3320 = vmatprep.mubr.msk.f32.mxu1 %vm379_vm1, %v1760_v42 }
 0x566   : > { %3316 = vmatprep.subr.mxu1 %v2037_v46  ;;  %3329 = vmatprep.subr.mxu0 %v2123_v47 }
 0x567   : > { %3317 = vmatpush3.msra.mxu1 %v2037_v46  ;;  %3330 = vmatpush3.msra.mxu0 %v2123_v47  ;;  %v2419_v46 = vld [vmem:[%s4096_s5 + $0x30] sm:$0xff]  ;;  %v2418_v47 = vld [vmem:[%s4096_s5 + $0x28] sm:$0xff] }
 0x568   : > { %3331 = vmatprep.mubr.msk.f32.mxu0 %vm379_vm1, %v1770_v51  ;;  %3318 = vmatprep.subr.mxu1 %v2036_v52 }
 0x569   : > { %3332 = vmatmul.mubr.msk.f32.vlgmr.msra.gmra.mxu0 %vm379_vm1, %v3278_v45  ;;  %3319 = vmatpush3.msra.mxu1 %v2036_v52 }
 0x56a   : > { %3321 = vmatmul.mubr.msk.f32.vlgmr.msra.gmra.mxu1 %vm379_vm1, %v3275_v39  ;;  %3334 = vmatprep.subr.mxu1 %v3446_v1 }
 0x56b   : > { %3335 = vmatpush3.msra.mxu1 %v2222_v54  ;;  %3342 = vmatprep.mubr.msk.f32.mxu1 %vm3447_vm0, %v3446_v1 }
 0x56c   : > { %3336 = vmatprep.subr.mxu1 %v3446_v1  ;;  %3345 = vmatprep.subr.mxu0 %v2222_v54 }
 0x56d   : > { %3337 = vmatpush3.msra.mxu1 %v2221_v50  ;;  %3346 = vmatpush3.msra.mxu0 %v2222_v54 }
 0x56e   : > { %3338 = vmatprep.subr.mxu1 %v3446_v1  ;;  %3347 = vmatprep.subr.mxu0 %v2221_v50 }
 0x56f   : > { %3339 = vmatpush3.msra.mxu1 %v2220_v56  ;;  %3348 = vmatpush3.msra.mxu0 %v2221_v50 }
 0x570   : > { %3340 = vmatprep.subr.mxu1 %v3446_v1  ;;  %3349 = vmatprep.subr.mxu0 %v2220_v56 }
 0x571   : > { %3341 = vmatpush3.msra.mxu1 %v2219_v59  ;;  %3350 = vmatpush3.msra.mxu0 %v2220_v56 }
 0x572   : > { %3343 = vmatmul.mubr.msk.f32.vlgmr.msra.gmra.mxu1 %vm379_vm1, %v474_v60  ;;  %3351 = vmatprep.subr.mxu0 %v2219_v59 }
 0x573   : > { %3352 = vmatpush3.msra.mxu0 %v2219_v59  ;;  %3356 = vmatprep.subr.mxu1 %v3446_v1 }
 0x574   : > { %3367 = vmatprep.subr.mxu0 %v3446_v1  ;;  %3364 = vmatprep.mubr.msk.f32.mxu1 %vm3447_vm0, %v3446_v1 }
 0x575   : > { %3357 = vmatpush3.msra.mxu1 %v2420_v49 }
 0x576   : > { %3358 = vmatprep.subr.mxu1 %v3446_v1 }
 0x577   : > { %3359 = vmatpush3.msra.mxu1 %v2419_v46 }
 0x578   : > { %3360 = vmatprep.subr.mxu1 %v3446_v1 }
 0x579   : > { %3361 = vmatpush3.msra.mxu1 %v2418_v47 }
 0x57a   : > { %3362 = vmatprep.subr.mxu1 %v3446_v1 }
 0x57b   : > { %3363 = vmatpush3.msra.mxu1 %v2417_v48 }
 0x57c   : > { %3378 = vmatprep.subr.mxu1 %v3446_v1 }
 0x61a   : > { %v3289_v61 = vpop.f32.mrf.mxu1 }
 0x61c   : > { %v1859_v62 = vpop.f32.mrf.mxu1 }
 0x61e   : > { %v3311_v3 = vpop.f32.mrf.mxu0 }
 0x620   : > { %v2025_v14 = vpop.f32.mrf.mxu0 }
 0x622   : > { %v3300_v0 = vpop.f32.mrf.mxu1 }
 0x623   : > { %v1946_v12 = vadd.f32 %v3300_v0, %v3289_v61 }
 0x624   : > { %v1940_v11 = vpop.f32.mrf.mxu1 }
 0x625   : > { %v1941_v13 = vadd.f32 %v1940_v11, %v1859_v62  ;;  %v2035_v15 = vadd.f32 %v3311_v3, %v1946_v12  ;;  %v2574_v12 = vld [vmem:[%s4096_s5 + $0x78] sm:$0xff] }
 0x627   : > { %v2034_v18 = vadd.f32 %v2025_v14, %v1941_v13  ;;  %v2573_v13 = vld [vmem:[%s4096_s5 + $0x70] sm:$0xff]  ;;  %v2572_v14 = vld [vmem:[%s4096_s5 + $0x68] sm:$0xff] }
 0x629   : > { %v3333_v41 = vpop.f32.mrf.mxu0 }
 0x62a   : > { %v3322_v16 = vpop.f32.mrf.mxu1 }
 0x62b   : > { %v2122_v17 = vadd.f32 %v3322_v16, %v2035_v15  ;;  %v2199_v23 = vpop.f32.mrf.mxu0  ;;  %v2571_v15 = vld [vmem:[%s4096_s5 + $0x60] sm:$0xff]  ;;  %v2569_v16 = vld [vmem:[%s4096_s5 + $0x50] sm:$0xff] }
 0x62c   : > { %v2112_v19 = vpop.f32.mrf.mxu1 }
 0x62d   : > { %v2209_v20 = vadd.f32 %v3333_v41, %v2122_v17  ;;  %v2121_v22 = vadd.f32 %v2112_v19, %v2034_v18  ;;  %v2570_v41 = vld [vmem:[%s4096_s5 + $0x58] sm:$0xff]  ;;  %v2568_v17 = vld [vmem:[%s4096_s5 + $0x48] sm:$0xff]  ;;  %v2567_v18 = vld [vmem:[%s4096_s5 + $0x40] sm:$0xff] }
 0x62e   : > { %v2658_v19 = vld [vmem:[%s4096_s5 + $0xb8] sm:$0xff] }
 0x62f   : > { %v2208_v24 = vadd.f32 %v2199_v23, %v2121_v22  ;;  %v2216_v25 = vadd.f32 %v2880_v21, %v2209_v20  ;;  %v2657_v20 = vld [vmem:[%s4096_s5 + $0xb0] sm:$0xff]  ;;  %v2655_v22 = vld [vmem:[%s4096_s5 + $0xa0] sm:$0xff]  ;;  %v2654_v23 = vld [vmem:[%s4096_s5 + $0x98] sm:$0xff] }
 0x631   : > { %v2215_v63 = vadd.f32 %v2880_v21, %v2208_v24  ;;  %v2218_v5 = vmax.f32 %v2216_v25, 0.0  ;;  %v2656_v21 = vld [vmem:[%s4096_s5 + $0xa8] sm:$0xff]  ;;  %v2564_v25 = vld [vmem:[%s4096_s5 + $0xc0] sm:$0x1] }
 0x632   : > { %v2294_v2 = vpop.f32.mrf.mxu1 }
 0x633   : > { %v2217_v4 = vmax.f32 %v2215_v63, 0.0  ;;  %v2295_v28 = vadd.f32 %v2294_v2, %v2223_v26 }
 0x634   : > { %v3344_v6 = vpop.f32.mrf.mxu1 }
 0x635   : > { %3353 = vmatprep.mubr.msk.f32.mxu0 %vm379_vm1, %v2217_v4  ;;  %v2298_v30 = vmax.f32 %v2295_v28, 0.0  ;;  %v2653_v6 = vld [vmem:[%s4096_s5 + $0x90] sm:$0xff] }
 0x636   : > { %3354 = vmatmul.mubr.msk.f32.vlgmr.msra.gmra.mxu0 %vm379_vm1, %v2218_v5 }
 0x637   : > { %3368 = vmatpush3.msra.mxu0 %v2416_v7  ;;  %3375 = vmatprep.mubr.msk.f32.mxu0 %vm3447_vm0, %v3446_v1  ;;  %v2389_v36 = vrot.slane %v2298_v30, %v2388_v31  ;;  %v2652_v7 = vld [vmem:[%s4096_s5 + $0x88] sm:$0xff] }
 0x638   : > { %3369 = vmatprep.subr.mxu0 %v3446_v1 }
 0x639   : > { %3370 = vmatpush3.msra.mxu0 %v2415_v8  ;;  %v2651_v8 = vld [vmem:[%s4096_s5 + $0x80] sm:$0xff] }
 0x63a   : > { %3371 = vmatprep.subr.mxu0 %v3446_v1 }
 0x63b   : > { %3372 = vmatpush3.msra.mxu0 %v2414_v9  ;;  %v2575_v9 = vld [vmem:[%s4096_s5 + $0xc1] sm:$0x1] }
 0x63c   : > { %3373 = vmatprep.subr.mxu0 %v3446_v1 }
 0x63d   : > { %3374 = vmatpush3.msra.mxu0 %v2413_v10 }
 0x63e   : > { %3376 = vmatmul.mubr.msk.f32.vlgmr.msra.gmra.mxu0 %vm379_vm1, %v474_v60  ;;  %3397 = vmatprep.subr.mxu0 %v3446_v1 }
 0x63f   : > { %3413 = vmatprep.mubr.msk.f32.mxu0 %vm3447_vm0, %v3446_v1  ;;  %3398 = vmatpush3.msra.mxu0 %v2658_v19 }
 0x640   : > { %3399 = vmatprep.subr.mxu0 %v3446_v1 }
 0x641   : > { %3400 = vmatpush3.msra.mxu0 %v2657_v20 }
 0x642   : > { %3401 = vmatprep.subr.mxu0 %v3446_v1 }
 0x643   : > { %3402 = vmatpush3.msra.mxu0 %v2656_v21 }
 0x644   : > { %3403 = vmatprep.subr.mxu0 %v3446_v1 }
 0x645   : > { %3404 = vmatpush3.msra.mxu0 %v2655_v22 }
 0x646   : > { %3405 = vmatprep.subr.mxu0 %v3446_v1 }
 0x647   : > { %3406 = vmatpush3.msra.mxu0 %v2654_v23 }
 0x648   : > { %3407 = vmatprep.subr.mxu0 %v3446_v1 }
 0x649   : > { %3408 = vmatpush3.msra.mxu0 %v2653_v6 }
 0x64a   : > { %3409 = vmatprep.subr.mxu0 %v3446_v1 }
 0x64b   : > { %3410 = vmatpush3.msra.mxu0 %v2652_v7 }
 0x64c   : > { %3411 = vmatprep.subr.mxu0 %v3446_v1 }
 0x64d   : > { %3412 = vmatpush3.msra.mxu0 %v2651_v8 }
 0x6f6   : > { %v3355_v33 = vpop.f32.mrf.mxu0 }
 0x6f7   : > { %v2381_v34 = vadd.f32 %v3355_v33, %v2302_v29 }
 0x6f8   : > { %v2375_v35 = vpop.f32.mrf.mxu0 }
 0x6f9   : > { %v2385_v37 = vmax.f32 %v2381_v34, 0.0  ;;  %v2376_v38 = vadd.f32 %v2375_v35, %v2302_v29  ;;  %v2659_v29 = vld [vmem:[%s4096_s5 + $0xc2] sm:$0x1] }
 0x6fb   : > { %v2384_v39 = vmax.f32 %v2376_v38, 0.0  ;;  %v2391_v40 = vmul.f32 %v2389_v36, %v2385_v37 }
 0x6fd   : > { %v2395_v42 = vsel %vm379_vm1, %v2391_v40, 0.0  ;;  %v2390_v43 = vmul.f32 %v2389_v36, %v2384_v39 }
 0x6fe   : > { %v3980_v44 = vpop.f32.mrf.mxu0  ;;  %2396 = vadd.xlane.f32.xlu1 %v2395_v42 }
 0x6ff   : > { %v2392_v45 = vsel %vm379_vm1, %v2390_v43, 0.0 }
 0x700   : > { %v3377_v32 = vpop.f32.mrf.mxu0  ;;  %2393 = vadd.xlane.f32.xlu0 %v2392_v45 }
 0x787   : > { %v2397_v51 = vpop.xlane.xlu1 %2396 }
 0x788   : > { %3434 = vtanh.f32 %v2397_v51 }
 0x789   : > { %v2394_v52 = vpop.xlane.xlu0 %2393 }
 0x78a   : > { %3436 = vtanh.f32 %v2394_v52 }
 0x795   : > { %v3435_v53 = vpop.eup %3434 }
 0x796   : > { %v2401_v54 = vmul.f32 %v3435_v53, %v2385_v37  ;;  %v2735_v37 = vld [vmem:[%s4096_s5 + $0xc4] sm:$0x1] }
 0x797   : > { %v3437_v55 = vpop.eup %3436 }
 0x798   : > { %v2400_v50 = vmul.f32 %v3437_v55, %v2384_v39  ;;  %v2403_v56 = vsel %vm379_vm1, %v2401_v54, 0.0 }
 0x79a   : > { %v2402_v57 = vsel %vm379_vm1, %v2400_v50, 0.0 }
 0x79b   : > { %v2404_v58 = vadd.f32 %v2403_v56, %v2402_v57 }
 0x79d   : > { %v2405_v59 = vrot.slane %v2404_v58, 4 }
 0x79f   : > { %v2406_v60 = vadd.f32 %v2405_v59, %v2404_v58 }
 0x7a1   : > { %v2407_v61 = vrot.slane %v2406_v60, 2 }
 0x7a3   : > { %v2408_v62 = vadd.f32 %v2407_v61, %v2406_v60 }
 0x7a5   : > { %v2409_v0 = vrot.slane %v2408_v62, 1 }
 0x7a7   : > { %v2410_v3 = vadd.f32 %v2409_v0, %v2408_v62 }
 0x7a9   : > { %v2412_v11 = vmul.f32 0.0625, %v2410_v3 }
 0x7ab   : > { %3365 = vmatmul.mubr.msk.f32.vlgmr.msra.gmra.mxu1 %vm379_vm1, %v2412_v11 }
 0x7ac   : > { %3379 = vmatpush3.msra.mxu1 %v2574_v12  ;;  %3394 = vmatprep.mubr.msk.f32.mxu1 %vm3447_vm0, %v3446_v1 }
 0x7ad   : > { %3380 = vmatprep.subr.mxu1 %v3446_v1 }
 0x7ae   : > { %3381 = vmatpush3.msra.mxu1 %v2573_v13 }
 0x7af   : > { %3382 = vmatprep.subr.mxu1 %v3446_v1 }
 0x7b0   : > { %3383 = vmatpush3.msra.mxu1 %v2572_v14 }
 0x7b1   : > { %3384 = vmatprep.subr.mxu1 %v3446_v1 }
 0x7b2   : > { %3385 = vmatpush3.msra.mxu1 %v2571_v15 }
 0x7b3   : > { %3386 = vmatprep.subr.mxu1 %v3446_v1 }
 0x7b4   : > { %3387 = vmatpush3.msra.mxu1 %v2570_v41 }
 0x7b5   : > { %3388 = vmatprep.subr.mxu1 %v3446_v1 }
 0x7b6   : > { %3389 = vmatpush3.msra.mxu1 %v2569_v16 }
 0x7b7   : > { %3390 = vmatprep.subr.mxu1 %v3446_v1 }
 0x7b8   : > { %3391 = vmatpush3.msra.mxu1 %v2568_v17 }
 0x7b9   : > { %3392 = vmatprep.subr.mxu1 %v3446_v1  ;;  %v2734_v1 = vld [vmem:[%s4096_s5 + $0xc3] sm:$0x1] }
 0x7ba   : > { %3393 = vmatpush3.msra.mxu1 %v2567_v18 }
 0x86b   : > { %v2490_v24 = vpop.f32.mrf.mxu1 }
 0x86c   : > { %v2561_v63 = vadd.f32 %v3980_v44, %v2490_v24 }
 0x86d   : > { %v3366_v2 = vpop.f32.mrf.mxu1 }
 0x86e   : > { %v2565_v4 = vadd.f32 %v2564_v25, %v2561_v63 }
 0x870   : > { %v2566_v5 = vmax.f32 %v2565_v4, 0.0 }
 0x872   : > { %3395 = vmatmul.mubr.msk.f32.vlgmr.msra.gmra.mxu1 %vm2576_vm5, %v2566_v5 }
 0x932   : > { %v2646_v10 = vpop.f32.mrf.mxu1 }
 0x933   : > { %v2647_v26 = vadd.f32 %v2646_v10, %v2575_v9 }
 0x934   : > { %v3396_v27 = vpop.f32.mrf.mxu1 }
 0x935   : > { %v2650_v28 = vmax.f32 %v2647_v26, 0.0 }
 0x937   : > { %3414 = vmatmul.mubr.msk.f32.vlgmr.msra.gmra.mxu0 %vm2576_vm5, %v2650_v28 }
 0x9f7   : > { %v2729_v30 = vpop.f32.mrf.mxu0 }
 0x9f8   : > { %v2730_v31 = vadd.f32 %v2729_v30, %v2659_v29 }
 0x9f9   : > { %v3415_v33 = vpop.f32.mrf.mxu0 }
 0x9fa   : > { %v2733_v34 = vmax.f32 %v2730_v31, 0.0 }
 0x9fc   : > { %v2736_v35 = vmul.f32 %v2734_v1, %v2733_v34 }
 0x9fe   : > { %v2738_v36 = vsel %vm2737_vm6, %v2736_v35, 0.0 }
 0x9ff   : > { %2739 = vadd.xlane.f32.xlu0 %v2738_v36 }
 0xa88   : > { %v2740_v38 = vpop.xlane.xlu0 %2739 }
 0xa89   : > { %v2741_v39 = vadd.f32 %v2740_v38, %v2735_v37 }
 0xa8b   : > { %2743 = vst.msk [vmem:[%s275_s15] sm:$0x1] %vm2742_vm7, %v2741_v39 }
 0xa8c PF: > { %s16_s21 = sadd.s32 1, %s3444_s21  }
 0xa8d   : > { %p13_p4 = scmp.ge.s32.totalorder %s16_s21, 4  }
 0xa8f   :  { %15 = sbr.rel (!%p13_p4) target bundleno = 1 (0x1), region = 80 }

</bundles_post_ra>
